<compile_context>
chip_gen: v7x
topology: tpu7x:2x2x1
jax: 0.10.0
libtpu: 0.0.40
codegen_flags: <defaults>
</compile_context>

<pallas_src>
import jax
import jax.numpy as jnp
from jax import lax
from jax.experimental import pallas as pl
from jax.experimental.pallas import tpu as pltpu

# ---- config (mirrors the dataclass `config` implied by MDNRNN.__init__) ----
INPUT_SIZE = 16
HIDDEN_SIZE = 32
OUTPUT_SIZE = 8          # proj_size of the LSTM == MDN input/output size
N_LAYERS = 2
N_GAUSSIANS = 5
SEQ = 8
BATCH = 1                # MDN.forward does x.squeeze(0) -> batch must be 1
TEMP = 1.0               # defined in MDN.__init__ but unused in forward

MDN_W = 128              # lane-dense MDN output slab width
assert N_GAUSSIANS + 2 * N_GAUSSIANS * OUTPUT_SIZE <= MDN_W


# --------------------------- fused Pallas kernel -----------------------------
def _mdnrnn_kernel(x_ref, h0_ref, c0_ref,
                   wih0_ref, whh0_ref, wrec0_ref, b0_ref, whr0_ref,
                   wih1_ref, whh1_ref, wrec1_ref, b1_ref, whr1_ref,
                   wmdn_ref, bmdn_ref,
                   mdn_ref, hN_ref, cN_ref,
                   hraw_ref):
    T = x_ref.shape[0]
    H = HIDDEN_SIZE
    G, O = N_GAUSSIANS, OUTPUT_SIZE

    def run_layer(x_contrib, h0, c0, whhT, wrecT, b, whrT):
        # x_contrib: (T, 4H) precomputed X @ Wih^T (batched, M=T).
        # h0: (1, O) projected initial state; c0: (1, H).
        # Recurrence runs on the UNPROJECTED h_raw (projection folded into
        # wrecT = (whh @ whr)^T); projected y is one batched matmul at the end.
        c = c0
        h_raw = None
        for t in range(T):            # T small & static -> unrolled, static slices
            if t == 0:
                rec = jnp.dot(h0, whhT, preferred_element_type=jnp.float32)
            else:
                rec = jnp.dot(h_raw, wrecT, preferred_element_type=jnp.float32)
            gates = x_contrib[t:t + 1, :] + rec + b          # (1, 4H)
            sig = jax.nn.sigmoid(gates)                      # full-vreg EUP op
            tnh = jnp.tanh(gates)                            # full-vreg EUP op
            i = sig[:, 0 * H:1 * H]
            f = sig[:, 1 * H:2 * H]
            g = tnh[:, 2 * H:3 * H]
            o = sig[:, 3 * H:4 * H]
            c = f * c + i * g
            h_raw = o * jnp.tanh(c)
            hraw_ref[t:t + 1, :] = h_raw
        # batched projection of all timesteps: (T, H) @ (H, O)
        y = jnp.dot(hraw_ref[...], whrT, preferred_element_type=jnp.float32)
        return y, c

    # ---- layer 0: one (T, 4H) input matmul, then the recurrence ----
    xc0 = jnp.dot(x_ref[...], wih0_ref[...], preferred_element_type=jnp.float32)
    y0, c0f = run_layer(xc0, h0_ref[0:1, :], c0_ref[0:1, :],
                        whh0_ref[...], wrec0_ref[...], b0_ref[...], whr0_ref[...])
    # ---- layer 1 (input = layer-0 projected output) ----
    xc1 = jnp.dot(y0, wih1_ref[...], preferred_element_type=jnp.float32)
    y1, c1f = run_layer(xc1, h0_ref[1:2, :], c0_ref[1:2, :],
                        whh1_ref[...], wrec1_ref[...], b1_ref[...], whr1_ref[...])

    # ---- fused MDN head: single matmul -> lane-dense (T, 128) slab ----
    z = jnp.dot(y1, wmdn_ref[...], preferred_element_type=jnp.float32) + bmdn_ref[...]
    lane = lax.broadcasted_iota(jnp.int32, z.shape, 1)
    logits = jnp.where(lane < G, z, jnp.float32(-1e30))      # mask non-pi lanes
    m = jnp.max(logits, axis=1, keepdims=True)
    e = jnp.where(lane < G, jnp.exp(logits - m), 0.0)
    pi = e / jnp.sum(e, axis=1, keepdims=True)
    GO = G * O
    mdn_ref[...] = jnp.where(lane < G, pi,
                   jnp.where(lane < G + GO, z,
                   jnp.where(lane < G + 2 * GO, jnp.exp(z), 0.0)))

    # ---- final states (projected h_n per layer, raw c_n per layer) ----
    hN_ref[0:1, :] = y0[T - 1:T, :]
    hN_ref[1:2, :] = y1[T - 1:T, :]
    cN_ref[0:1, :] = c0f
    cN_ref[1:2, :] = c1f


# ------------------------------ wrappers -------------------------------------
_VMEM = pl.BlockSpec(memory_space=pltpu.MemorySpace.VMEM)


def prepare_kernel_params(p):
    """Pre-transpose / fold / concatenate weights once (outside the kernel)."""
    H, G, O = HIDDEN_SIZE, N_GAUSSIANS, OUTPUT_SIZE

    def fold(whh, whr):                # (4H, O) @ (O, H) -> transpose -> (H, 4H)
        return (whh @ whr).T

    wmdn = jnp.concatenate([p["pi_w"].T, p["mu_w"].T, p["sg_w"].T], axis=1)  # (O, 85)
    bmdn = jnp.concatenate([p["pi_b"], p["mu_b"], p["sg_b"]], axis=1)        # (1, 85)
    pad = MDN_W - wmdn.shape[1]
    wmdn = jnp.pad(wmdn, ((0, 0), (0, pad)))
    bmdn = jnp.pad(bmdn, ((0, 0), (0, pad)))
    return {
        "wihT0": p["wih0"].T, "whhT0": p["whh0"].T,
        "wrecT0": fold(p["whh0"], p["whr0"]), "b0": p["b0"], "whrT0": p["whr0"].T,
        "wihT1": p["wih1"].T, "whhT1": p["whh1"].T,
        "wrecT1": fold(p["whh1"], p["whr1"]), "b1": p["b1"], "whrT1": p["whr1"].T,
        "wmdn": wmdn, "bmdn": bmdn,
    }


def mdnrnn_forward(x, h, params):
    """x: (1, T, input_size); h = (h0 (L,1,O), c0 (L,1,H)). Returns (pi, mu, sigma, h')."""
    kp = prepare_kernel_params(params)
    x2d = x[0]                      # batch_first, batch == 1
    h0 = h[0][:, 0, :]              # (L, O)
    c0 = h[1][:, 0, :]              # (L, H)
    T = x2d.shape[0]
    G, O, H = N_GAUSSIANS, OUTPUT_SIZE, HIDDEN_SIZE

    args = (x2d, h0, c0,
            kp["wihT0"], kp["whhT0"], kp["wrecT0"], kp["b0"], kp["whrT0"],
            kp["wihT1"], kp["whhT1"], kp["wrecT1"], kp["b1"], kp["whrT1"],
            kp["wmdn"], kp["bmdn"])

    mdn_slab, hN, cN = pl.pallas_call(
        _mdnrnn_kernel,
        out_shape=(
            jax.ShapeDtypeStruct((T, MDN_W), jnp.float32),      # lane-dense MDN slab
            jax.ShapeDtypeStruct((N_LAYERS, O), jnp.float32),   # h_n (projected)
            jax.ShapeDtypeStruct((N_LAYERS, H), jnp.float32),   # c_n
        ),
        in_specs=[_VMEM] * len(args),
        out_specs=(_VMEM, _VMEM, _VMEM),
        scratch_shapes=[pltpu.VMEM((T, H), jnp.float32)],       # per-layer h_raw buffer
    )(*args)

    GO = G * O
    pi = mdn_slab[:, :G]
    mu = mdn_slab[:, G:G + GO].reshape(T, G, O)
    sigma = mdn_slab[:, G + GO:G + 2 * GO].reshape(T, G, O)
    return pi, mu, sigma, (hN[:, None, :], cN[:, None, :])


# TODO(synk): MDN.loss (log-prob / logsumexp NLL) is not part of forward(); not ported.


# --------------------------- pure-JAX reference -------------------------------
def mdnrnn_reference(x, h, p):
    x2d = x[0]
    hs = [h[0][l, 0] for l in range(N_LAYERS)]
    cs = [h[1][l, 0] for l in range(N_LAYERS)]
    H = HIDDEN_SIZE
    layer_w = [(p["wih0"], p["whh0"], p["b0"][0], p["whr0"]),
               (p["wih1"], p["whh1"], p["b1"][0], p["whr1"])]
    ys = []
    for t in range(x2d.shape[0]):
        inp = x2d[t]
        for l, (wih, whh, b, whr) in enumerate(layer_w):
            g = inp @ wih.T + hs[l] @ whh.T + b
            i = jax.nn.sigmoid(g[0:H]); f = jax.nn.sigmoid(g[H:2 * H])
            gg = jnp.tanh(g[2 * H:3 * H]); o = jax.nn.sigmoid(g[3 * H:4 * H])
            cs[l] = f * cs[l] + i * gg
            hs[l] = (o * jnp.tanh(cs[l])) @ whr.T
            inp = hs[l]
        ys.append(inp)
    y = jnp.stack(ys)
    pi = jax.nn.softmax(y @ p["pi_w"].T + p["pi_b"][0], axis=1)
    mu = (y @ p["mu_w"].T + p["mu_b"][0]).reshape(-1, N_GAUSSIANS, OUTPUT_SIZE)
    sg = jnp.exp(y @ p["sg_w"].T + p["sg_b"][0]).reshape(-1, N_GAUSSIANS, OUTPUT_SIZE)
    return pi, mu, sg, (jnp.stack(hs)[:, None, :], jnp.stack(cs)[:, None, :])


# ------------------------------- main -----------------------------------------
def init_params(key):
    """Deterministic synthetic weights (PyTorch-style uniform fan-in scaling)."""
    ks = jax.random.split(key, 16)
    k_lstm = 1.0 / jnp.sqrt(HIDDEN_SIZE)

    def u(k, shape, scale):
        return jax.random.uniform(k, shape, jnp.float32, -scale, scale)

    G, O, H, I = N_GAUSSIANS, OUTPUT_SIZE, HIDDEN_SIZE, INPUT_SIZE
    return {
        # layer 0
        "wih0": u(ks[0], (4 * H, I), k_lstm),
        "whh0": u(ks[1], (4 * H, O), k_lstm),       # proj_size -> hh takes O
        "b0":   u(ks[2], (1, 4 * H), k_lstm),       # combined b_ih + b_hh
        "whr0": u(ks[3], (O, H), k_lstm),           # projection
        # layer 1 (input size == proj_size)
        "wih1": u(ks[4], (4 * H, O), k_lstm),
        "whh1": u(ks[5], (4 * H, O), k_lstm),
        "b1":   u(ks[6], (1, 4 * H), k_lstm),
        "whr1": u(ks[7], (O, H), k_lstm),
        # MDN head (Linear: uniform(-1/sqrt(fan_in), ...))
        "pi_w": u(ks[8], (G, O), 1.0 / jnp.sqrt(O)),
        "pi_b": u(ks[9], (1, G), 1.0 / jnp.sqrt(O)),
        "mu_w": u(ks[10], (G * O, O), 1.0 / jnp.sqrt(O)),
        "mu_b": u(ks[11], (1, G * O), 1.0 / jnp.sqrt(O)),
        "sg_w": u(ks[12], (G * O, O), 1.0 / jnp.sqrt(O)),
        "sg_b": u(ks[13], (1, G * O), 1.0 / jnp.sqrt(O)),
    }


if __name__ == "__main__":
    key = jax.random.PRNGKey(0)
    k_param, k_x = jax.random.split(key)
    params = init_params(k_param)

    x = jax.random.normal(k_x, (BATCH, SEQ, INPUT_SIZE), jnp.float32)
    # MDNRNN.initial_state(batch_size)
    h = (jnp.zeros((N_LAYERS, BATCH, OUTPUT_SIZE), jnp.float32),
         jnp.zeros((N_LAYERS, BATCH, HIDDEN_SIZE), jnp.float32))

    fwd = jax.jit(mdnrnn_forward)
    pi, mu, sigma, h_out = fwd(x, h, params)
    jax.block_until_ready((pi, mu, sigma, h_out))

    # correctness check against a pure-JAX reference
    pi_r, mu_r, sg_r, h_r = mdnrnn_reference(x, h, params)
    assert pi.shape == (SEQ, N_GAUSSIANS)
    assert mu.shape == (SEQ, N_GAUSSIANS, OUTPUT_SIZE)
    assert sigma.shape == (SEQ, N_GAUSSIANS, OUTPUT_SIZE)
    assert jnp.allclose(pi, pi_r, atol=1e-4, rtol=1e-4)
    assert jnp.allclose(mu, mu_r, atol=1e-4, rtol=1e-4)
    assert jnp.allclose(sigma, sg_r, atol=1e-4, rtol=1e-4)
    assert jnp.allclose(h_out[0], h_r[0], atol=1e-4, rtol=1e-4)
    assert jnp.allclose(h_out[1], h_r[1], atol=1e-4, rtol=1e-4)

    print("KERNEL_OK")
</pallas_src>

<mosaic_0001>
module attributes {stable_mosaic.version = 11 : i64} {
  func.func @_mdnrnn_kernel(%arg0: memref<8x16xf32, #tpu.memory_space<vmem>>, %arg1: memref<2x8xf32, #tpu.memory_space<vmem>>, %arg2: memref<2x32xf32, #tpu.memory_space<vmem>>, %arg3: memref<16x128xf32, #tpu.memory_space<vmem>>, %arg4: memref<8x128xf32, #tpu.memory_space<vmem>>, %arg5: memref<32x128xf32, #tpu.memory_space<vmem>>, %arg6: memref<1x128xf32, #tpu.memory_space<vmem>>, %arg7: memref<32x8xf32, #tpu.memory_space<vmem>>, %arg8: memref<8x128xf32, #tpu.memory_space<vmem>>, %arg9: memref<8x128xf32, #tpu.memory_space<vmem>>, %arg10: memref<32x128xf32, #tpu.memory_space<vmem>>, %arg11: memref<1x128xf32, #tpu.memory_space<vmem>>, %arg12: memref<32x8xf32, #tpu.memory_space<vmem>>, %arg13: memref<8x128xf32, #tpu.memory_space<vmem>>, %arg14: memref<1x128xf32, #tpu.memory_space<vmem>>, %arg15: memref<8x128xf32, #tpu.memory_space<vmem>>, %arg16: memref<2x8xf32, #tpu.memory_space<vmem>>, %arg17: memref<2x32xf32, #tpu.memory_space<vmem>>, %arg18: memref<8x32xf32, #tpu.memory_space<vmem>>) attributes {dimension_semantics = [], scalar_prefetch = 0 : i64, scratch_operands = 1 : i64, tpu.core_type = #tpu.core_type<tc>} {
    %c0 = arith.constant 0 : index
    %c0_0 = arith.constant 0 : index
    %0 = vector.load %arg0[%c0, %c0_0] : memref<8x16xf32, #tpu.memory_space<vmem>>, vector<8x16xf32>
    %c0_1 = arith.constant 0 : index
    %c0_2 = arith.constant 0 : index
    %1 = vector.load %arg3[%c0_1, %c0_2] : memref<16x128xf32, #tpu.memory_space<vmem>>, vector<16x128xf32>
    %cst = arith.constant dense<0.000000e+00> : vector<8x128xf32>
    %2 = tpu.matmul %0, %1, %cst {dimension_numbers = #tpu.dot_dimension_numbers<[1], [0], [0], [1], [0, 0, 1, 1], [], []>} : vector<8x16xf32>, vector<16x128xf32>, vector<8x128xf32> -> vector<8x128xf32>
    %c0_3 = arith.constant 0 : index
    %c0_4 = arith.constant 0 : index
    %3 = vector.load %arg1[%c0_3, %c0_4] : memref<2x8xf32, #tpu.memory_space<vmem>>, vector<1x8xf32>
    %c0_5 = arith.constant 0 : index
    %c0_6 = arith.constant 0 : index
    %4 = vector.load %arg2[%c0_5, %c0_6] : memref<2x32xf32, #tpu.memory_space<vmem>>, vector<1x32xf32>
    %c0_7 = arith.constant 0 : index
    %c0_8 = arith.constant 0 : index
    %5 = vector.load %arg4[%c0_7, %c0_8] : memref<8x128xf32, #tpu.memory_space<vmem>>, vector<8x128xf32>
    %c0_9 = arith.constant 0 : index
    %c0_10 = arith.constant 0 : index
    %6 = vector.load %arg5[%c0_9, %c0_10] : memref<32x128xf32, #tpu.memory_space<vmem>>, vector<32x128xf32>
    %c0_11 = arith.constant 0 : index
    %c0_12 = arith.constant 0 : index
    %7 = vector.load %arg6[%c0_11, %c0_12] : memref<1x128xf32, #tpu.memory_space<vmem>>, vector<1x128xf32>
    %c0_13 = arith.constant 0 : index
    %c0_14 = arith.constant 0 : index
    %8 = vector.load %arg7[%c0_13, %c0_14] : memref<32x8xf32, #tpu.memory_space<vmem>>, vector<32x8xf32>
    %cst_15 = arith.constant dense<0.000000e+00> : vector<1x128xf32>
    %9 = tpu.matmul %3, %5, %cst_15 {dimension_numbers = #tpu.dot_dimension_numbers<[1], [0], [0], [1], [0, 0, 1, 1], [], []>} : vector<1x8xf32>, vector<8x128xf32>, vector<1x128xf32> -> vector<1x128xf32>
    %10 = vector.extract_strided_slice %2 {offsets = [0, 0], sizes = [1, 128], strides = [1, 1]} : vector<8x128xf32> to vector<1x128xf32>
    %11 = arith.addf %10, %9 : vector<1x128xf32>
    %12 = arith.addf %11, %7 : vector<1x128xf32>
    %13 = arith.negf %12 : vector<1x128xf32>
    %14 = math.exp %13 : vector<1x128xf32>
    %cst_16 = arith.constant 1.000000e+00 : f32
    %15 = vector.broadcast %cst_16 : f32 to vector<1x128xf32>
    %16 = arith.addf %15, %14 : vector<1x128xf32>
    %17 = arith.divf %15, %16 : vector<1x128xf32>
    %18 = math.tanh %12 : vector<1x128xf32>
    %19 = vector.extract_strided_slice %17 {offsets = [0, 0], sizes = [1, 32], strides = [1, 1]} : vector<1x128xf32> to vector<1x32xf32>
    %20 = vector.extract_strided_slice %17 {offsets = [0, 32], sizes = [1, 32], strides = [1, 1]} : vector<1x128xf32> to vector<1x32xf32>
    %21 = vector.extract_strided_slice %18 {offsets = [0, 64], sizes = [1, 32], strides = [1, 1]} : vector<1x128xf32> to vector<1x32xf32>
    %22 = vector.extract_strided_slice %17 {offsets = [0, 96], sizes = [1, 32], strides = [1, 1]} : vector<1x128xf32> to vector<1x32xf32>
    %23 = arith.mulf %20, %4 : vector<1x32xf32>
    %24 = arith.mulf %19, %21 : vector<1x32xf32>
    %25 = arith.addf %23, %24 : vector<1x32xf32>
    %26 = math.tanh %25 : vector<1x32xf32>
    %27 = arith.mulf %22, %26 : vector<1x32xf32>
    %c0_17 = arith.constant 0 : index
    %c0_18 = arith.constant 0 : index
    %28 = vector.load %arg18[%c0_17, %c0_18] : memref<8x32xf32, #tpu.memory_space<vmem>>, vector<1x32xf32>
    tpu.vector_store %arg18[%c0_17, %c0_18], %27 {strides = array<i32>} : memref<8x32xf32, #tpu.memory_space<vmem>>, vector<1x32xf32>,
    %cst_19 = arith.constant dense<0.000000e+00> : vector<1x128xf32>
    %29 = tpu.matmul %27, %6, %cst_19 {dimension_numbers = #tpu.dot_dimension_numbers<[1], [0], [0], [1], [0, 0, 1, 1], [], []>} : vector<1x32xf32>, vector<32x128xf32>, vector<1x128xf32> -> vector<1x128xf32>
    %30 = vector.extract_strided_slice %2 {offsets = [1, 0], sizes = [1, 128], strides = [1, 1]} : vector<8x128xf32> to vector<1x128xf32>
    %31 = arith.addf %30, %29 : vector<1x128xf32>
    %32 = arith.addf %31, %7 : vector<1x128xf32>
    %33 = arith.negf %32 : vector<1x128xf32>
    %34 = math.exp %33 : vector<1x128xf32>
    %cst_20 = arith.constant 1.000000e+00 : f32
    %35 = vector.broadcast %cst_20 : f32 to vector<1x128xf32>
    %36 = arith.addf %35, %34 : vector<1x128xf32>
    %37 = arith.divf %35, %36 : vector<1x128xf32>
    %38 = math.tanh %32 : vector<1x128xf32>
    %39 = vector.extract_strided_slice %37 {offsets = [0, 0], sizes = [1, 32], strides = [1, 1]} : vector<1x128xf32> to vector<1x32xf32>
    %40 = vector.extract_strided_slice %37 {offsets = [0, 32], sizes = [1, 32], strides = [1, 1]} : vector<1x128xf32> to vector<1x32xf32>
    %41 = vector.extract_strided_slice %38 {offsets = [0, 64], sizes = [1, 32], strides = [1, 1]} : vector<1x128xf32> to vector<1x32xf32>
    %42 = vector.extract_strided_slice %37 {offsets = [0, 96], sizes = [1, 32], strides = [1, 1]} : vector<1x128xf32> to vector<1x32xf32>
    %43 = arith.mulf %40, %25 : vector<1x32xf32>
    %44 = arith.mulf %39, %41 : vector<1x32xf32>
    %45 = arith.addf %43, %44 : vector<1x32xf32>
    %46 = math.tanh %45 : vector<1x32xf32>
    %47 = arith.mulf %42, %46 : vector<1x32xf32>
    %c1 = arith.constant 1 : index
    %c0_21 = arith.constant 0 : index
    %48 = vector.load %arg18[%c1, %c0_21] : memref<8x32xf32, #tpu.memory_space<vmem>>, vector<1x32xf32>
    tpu.vector_store %arg18[%c1, %c0_21], %47 {strides = array<i32>} : memref<8x32xf32, #tpu.memory_space<vmem>>, vector<1x32xf32>,
    %cst_22 = arith.constant dense<0.000000e+00> : vector<1x128xf32>
    %49 = tpu.matmul %47, %6, %cst_22 {dimension_numbers = #tpu.dot_dimension_numbers<[1], [0], [0], [1], [0, 0, 1, 1], [], []>} : vector<1x32xf32>, vector<32x128xf32>, vector<1x128xf32> -> vector<1x128xf32>
    %50 = vector.extract_strided_slice %2 {offsets = [2, 0], sizes = [1, 128], strides = [1, 1]} : vector<8x128xf32> to vector<1x128xf32>
    %51 = arith.addf %50, %49 : vector<1x128xf32>
    %52 = arith.addf %51, %7 : vector<1x128xf32>
    %53 = arith.negf %52 : vector<1x128xf32>
    %54 = math.exp %53 : vector<1x128xf32>
    %cst_23 = arith.constant 1.000000e+00 : f32
    %55 = vector.broadcast %cst_23 : f32 to vector<1x128xf32>
    %56 = arith.addf %55, %54 : vector<1x128xf32>
    %57 = arith.divf %55, %56 : vector<1x128xf32>
    %58 = math.tanh %52 : vector<1x128xf32>
    %59 = vector.extract_strided_slice %57 {offsets = [0, 0], sizes = [1, 32], strides = [1, 1]} : vector<1x128xf32> to vector<1x32xf32>
    %60 = vector.extract_strided_slice %57 {offsets = [0, 32], sizes = [1, 32], strides = [1, 1]} : vector<1x128xf32> to vector<1x32xf32>
    %61 = vector.extract_strided_slice %58 {offsets = [0, 64], sizes = [1, 32], strides = [1, 1]} : vector<1x128xf32> to vector<1x32xf32>
    %62 = vector.extract_strided_slice %57 {offsets = [0, 96], sizes = [1, 32], strides = [1, 1]} : vector<1x128xf32> to vector<1x32xf32>
    %63 = arith.mulf %60, %45 : vector<1x32xf32>
    %64 = arith.mulf %59, %61 : vector<1x32xf32>
    %65 = arith.addf %63, %64 : vector<1x32xf32>
    %66 = math.tanh %65 : vector<1x32xf32>
    %67 = arith.mulf %62, %66 : vector<1x32xf32>
    %c2 = arith.constant 2 : index
    %c0_24 = arith.constant 0 : index
    %68 = vector.load %arg18[%c2, %c0_24] : memref<8x32xf32, #tpu.memory_space<vmem>>, vector<1x32xf32>
    tpu.vector_store %arg18[%c2, %c0_24], %67 {strides = array<i32>} : memref<8x32xf32, #tpu.memory_space<vmem>>, vector<1x32xf32>,
    %cst_25 = arith.constant dense<0.000000e+00> : vector<1x128xf32>
    %69 = tpu.matmul %67, %6, %cst_25 {dimension_numbers = #tpu.dot_dimension_numbers<[1], [0], [0], [1], [0, 0, 1, 1], [], []>} : vector<1x32xf32>, vector<32x128xf32>, vector<1x128xf32> -> vector<1x128xf32>
    %70 = vector.extract_strided_slice %2 {offsets = [3, 0], sizes = [1, 128], strides = [1, 1]} : vector<8x128xf32> to vector<1x128xf32>
    %71 = arith.addf %70, %69 : vector<1x128xf32>
    %72 = arith.addf %71, %7 : vector<1x128xf32>
    %73 = arith.negf %72 : vector<1x128xf32>
    %74 = math.exp %73 : vector<1x128xf32>
    %cst_26 = arith.constant 1.000000e+00 : f32
    %75 = vector.broadcast %cst_26 : f32 to vector<1x128xf32>
    %76 = arith.addf %75, %74 : vector<1x128xf32>
    %77 = arith.divf %75, %76 : vector<1x128xf32>
    %78 = math.tanh %72 : vector<1x128xf32>
    %79 = vector.extract_strided_slice %77 {offsets = [0, 0], sizes = [1, 32], strides = [1, 1]} : vector<1x128xf32> to vector<1x32xf32>
    %80 = vector.extract_strided_slice %77 {offsets = [0, 32], sizes = [1, 32], strides = [1, 1]} : vector<1x128xf32> to vector<1x32xf32>
    %81 = vector.extract_strided_slice %78 {offsets = [0, 64], sizes = [1, 32], strides = [1, 1]} : vector<1x128xf32> to vector<1x32xf32>
    %82 = vector.extract_strided_slice %77 {offsets = [0, 96], sizes = [1, 32], strides = [1, 1]} : vector<1x128xf32> to vector<1x32xf32>
    %83 = arith.mulf %80, %65 : vector<1x32xf32>
    %84 = arith.mulf %79, %81 : vector<1x32xf32>
    %85 = arith.addf %83, %84 : vector<1x32xf32>
    %86 = math.tanh %85 : vector<1x32xf32>
    %87 = arith.mulf %82, %86 : vector<1x32xf32>
    %c3 = arith.constant 3 : index
    %c0_27 = arith.constant 0 : index
    %88 = vector.load %arg18[%c3, %c0_27] : memref<8x32xf32, #tpu.memory_space<vmem>>, vector<1x32xf32>
    tpu.vector_store %arg18[%c3, %c0_27], %87 {strides = array<i32>} : memref<8x32xf32, #tpu.memory_space<vmem>>, vector<1x32xf32>,
    %cst_28 = arith.constant dense<0.000000e+00> : vector<1x128xf32>
    %89 = tpu.matmul %87, %6, %cst_28 {dimension_numbers = #tpu.dot_dimension_numbers<[1], [0], [0], [1], [0, 0, 1, 1], [], []>} : vector<1x32xf32>, vector<32x128xf32>, vector<1x128xf32> -> vector<1x128xf32>
    %90 = vector.extract_strided_slice %2 {offsets = [4, 0], sizes = [1, 128], strides = [1, 1]} : vector<8x128xf32> to vector<1x128xf32>
    %91 = arith.addf %90, %89 : vector<1x128xf32>
    %92 = arith.addf %91, %7 : vector<1x128xf32>
    %93 = arith.negf %92 : vector<1x128xf32>
    %94 = math.exp %93 : vector<1x128xf32>
    %cst_29 = arith.constant 1.000000e+00 : f32
    %95 = vector.broadcast %cst_29 : f32 to vector<1x128xf32>
    %96 = arith.addf %95, %94 : vector<1x128xf32>
    %97 = arith.divf %95, %96 : vector<1x128xf32>
    %98 = math.tanh %92 : vector<1x128xf32>
    %99 = vector.extract_strided_slice %97 {offsets = [0, 0], sizes = [1, 32], strides = [1, 1]} : vector<1x128xf32> to vector<1x32xf32>
    %100 = vector.extract_strided_slice %97 {offsets = [0, 32], sizes = [1, 32], strides = [1, 1]} : vector<1x128xf32> to vector<1x32xf32>
    %101 = vector.extract_strided_slice %98 {offsets = [0, 64], sizes = [1, 32], strides = [1, 1]} : vector<1x128xf32> to vector<1x32xf32>
    %102 = vector.extract_strided_slice %97 {offsets = [0, 96], sizes = [1, 32], strides = [1, 1]} : vector<1x128xf32> to vector<1x32xf32>
    %103 = arith.mulf %100, %85 : vector<1x32xf32>
    %104 = arith.mulf %99, %101 : vector<1x32xf32>
    %105 = arith.addf %103, %104 : vector<1x32xf32>
    %106 = math.tanh %105 : vector<1x32xf32>
    %107 = arith.mulf %102, %106 : vector<1x32xf32>
    %c4 = arith.constant 4 : index
    %c0_30 = arith.constant 0 : index
    %108 = vector.load %arg18[%c4, %c0_30] : memref<8x32xf32, #tpu.memory_space<vmem>>, vector<1x32xf32>
    tpu.vector_store %arg18[%c4, %c0_30], %107 {strides = array<i32>} : memref<8x32xf32, #tpu.memory_space<vmem>>, vector<1x32xf32>,
    %cst_31 = arith.constant dense<0.000000e+00> : vector<1x128xf32>
    %109 = tpu.matmul %107, %6, %cst_31 {dimension_numbers = #tpu.dot_dimension_numbers<[1], [0], [0], [1], [0, 0, 1, 1], [], []>} : vector<1x32xf32>, vector<32x128xf32>, vector<1x128xf32> -> vector<1x128xf32>
    %110 = vector.extract_strided_slice %2 {offsets = [5, 0], sizes = [1, 128], strides = [1, 1]} : vector<8x128xf32> to vector<1x128xf32>
    %111 = arith.addf %110, %109 : vector<1x128xf32>
    %112 = arith.addf %111, %7 : vector<1x128xf32>
    %113 = arith.negf %112 : vector<1x128xf32>
    %114 = math.exp %113 : vector<1x128xf32>
    %cst_32 = arith.constant 1.000000e+00 : f32
    %115 = vector.broadcast %cst_32 : f32 to vector<1x128xf32>
    %116 = arith.addf %115, %114 : vector<1x128xf32>
    %117 = arith.divf %115, %116 : vector<1x128xf32>
    %118 = math.tanh %112 : vector<1x128xf32>
    %119 = vector.extract_strided_slice %117 {offsets = [0, 0], sizes = [1, 32], strides = [1, 1]} : vector<1x128xf32> to vector<1x32xf32>
    %120 = vector.extract_strided_slice %117 {offsets = [0, 32], sizes = [1, 32], strides = [1, 1]} : vector<1x128xf32> to vector<1x32xf32>
    %121 = vector.extract_strided_slice %118 {offsets = [0, 64], sizes = [1, 32], strides = [1, 1]} : vector<1x128xf32> to vector<1x32xf32>
    %122 = vector.extract_strided_slice %117 {offsets = [0, 96], sizes = [1, 32], strides = [1, 1]} : vector<1x128xf32> to vector<1x32xf32>
    %123 = arith.mulf %120, %105 : vector<1x32xf32>
    %124 = arith.mulf %119, %121 : vector<1x32xf32>
    %125 = arith.addf %123, %124 : vector<1x32xf32>
    %126 = math.tanh %125 : vector<1x32xf32>
    %127 = arith.mulf %122, %126 : vector<1x32xf32>
    %c5 = arith.constant 5 : index
    %c0_33 = arith.constant 0 : index
    %128 = vector.load %arg18[%c5, %c0_33] : memref<8x32xf32, #tpu.memory_space<vmem>>, vector<1x32xf32>
    tpu.vector_store %arg18[%c5, %c0_33], %127 {strides = array<i32>} : memref<8x32xf32, #tpu.memory_space<vmem>>, vector<1x32xf32>,
    %cst_34 = arith.constant dense<0.000000e+00> : vector<1x128xf32>
    %129 = tpu.matmul %127, %6, %cst_34 {dimension_numbers = #tpu.dot_dimension_numbers<[1], [0], [0], [1], [0, 0, 1, 1], [], []>} : vector<1x32xf32>, vector<32x128xf32>, vector<1x128xf32> -> vector<1x128xf32>
    %130 = vector.extract_strided_slice %2 {offsets = [6, 0], sizes = [1, 128], strides = [1, 1]} : vector<8x128xf32> to vector<1x128xf32>
    %131 = arith.addf %130, %129 : vector<1x128xf32>
    %132 = arith.addf %131, %7 : vector<1x128xf32>
    %133 = arith.negf %132 : vector<1x128xf32>
    %134 = math.exp %133 : vector<1x128xf32>
    %cst_35 = arith.constant 1.000000e+00 : f32
    %135 = vector.broadcast %cst_35 : f32 to vector<1x128xf32>
    %136 = arith.addf %135, %134 : vector<1x128xf32>
    %137 = arith.divf %135, %136 : vector<1x128xf32>
    %138 = math.tanh %132 : vector<1x128xf32>
    %139 = vector.extract_strided_slice %137 {offsets = [0, 0], sizes = [1, 32], strides = [1, 1]} : vector<1x128xf32> to vector<1x32xf32>
    %140 = vector.extract_strided_slice %137 {offsets = [0, 32], sizes = [1, 32], strides = [1, 1]} : vector<1x128xf32> to vector<1x32xf32>
    %141 = vector.extract_strided_slice %138 {offsets = [0, 64], sizes = [1, 32], strides = [1, 1]} : vector<1x128xf32> to vector<1x32xf32>
    %142 = vector.extract_strided_slice %137 {offsets = [0, 96], sizes = [1, 32], strides = [1, 1]} : vector<1x128xf32> to vector<1x32xf32>
    %143 = arith.mulf %140, %125 : vector<1x32xf32>
    %144 = arith.mulf %139, %141 : vector<1x32xf32>
    %145 = arith.addf %143, %144 : vector<1x32xf32>
    %146 = math.tanh %145 : vector<1x32xf32>
    %147 = arith.mulf %142, %146 : vector<1x32xf32>
    %c6 = arith.constant 6 : index
    %c0_36 = arith.constant 0 : index
    %148 = vector.load %arg18[%c6, %c0_36] : memref<8x32xf32, #tpu.memory_space<vmem>>, vector<1x32xf32>
    tpu.vector_store %arg18[%c6, %c0_36], %147 {strides = array<i32>} : memref<8x32xf32, #tpu.memory_space<vmem>>, vector<1x32xf32>,
    %cst_37 = arith.constant dense<0.000000e+00> : vector<1x128xf32>
    %149 = tpu.matmul %147, %6, %cst_37 {dimension_numbers = #tpu.dot_dimension_numbers<[1], [0], [0], [1], [0, 0, 1, 1], [], []>} : vector<1x32xf32>, vector<32x128xf32>, vector<1x128xf32> -> vector<1x128xf32>
    %150 = vector.extract_strided_slice %2 {offsets = [7, 0], sizes = [1, 128], strides = [1, 1]} : vector<8x128xf32> to vector<1x128xf32>
    %151 = arith.addf %150, %149 : vector<1x128xf32>
    %152 = arith.addf %151, %7 : vector<1x128xf32>
    %153 = arith.negf %152 : vector<1x128xf32>
    %154 = math.exp %153 : vector<1x128xf32>
    %cst_38 = arith.constant 1.000000e+00 : f32
    %155 = vector.broadcast %cst_38 : f32 to vector<1x128xf32>
    %156 = arith.addf %155, %154 : vector<1x128xf32>
    %157 = arith.divf %155, %156 : vector<1x128xf32>
    %158 = math.tanh %152 : vector<1x128xf32>
    %159 = vector.extract_strided_slice %157 {offsets = [0, 0], sizes = [1, 32], strides = [1, 1]} : vector<1x128xf32> to vector<1x32xf32>
    %160 = vector.extract_strided_slice %157 {offsets = [0, 32], sizes = [1, 32], strides = [1, 1]} : vector<1x128xf32> to vector<1x32xf32>
    %161 = vector.extract_strided_slice %158 {offsets = [0, 64], sizes = [1, 32], strides = [1, 1]} : vector<1x128xf32> to vector<1x32xf32>
    %162 = vector.extract_strided_slice %157 {offsets = [0, 96], sizes = [1, 32], strides = [1, 1]} : vector<1x128xf32> to vector<1x32xf32>
    %163 = arith.mulf %160, %145 : vector<1x32xf32>
    %164 = arith.mulf %159, %161 : vector<1x32xf32>
    %165 = arith.addf %163, %164 : vector<1x32xf32>
    %166 = math.tanh %165 : vector<1x32xf32>
    %167 = arith.mulf %162, %166 : vector<1x32xf32>
    %c7 = arith.constant 7 : index
    %c0_39 = arith.constant 0 : index
    %168 = vector.load %arg18[%c7, %c0_39] : memref<8x32xf32, #tpu.memory_space<vmem>>, vector<1x32xf32>
    tpu.vector_store %arg18[%c7, %c0_39], %167 {strides = array<i32>} : memref<8x32xf32, #tpu.memory_space<vmem>>, vector<1x32xf32>,
    %c0_40 = arith.constant 0 : index
    %c0_41 = arith.constant 0 : index
    %169 = vector.load %arg18[%c0_40, %c0_41] : memref<8x32xf32, #tpu.memory_space<vmem>>, vector<8x32xf32>
    %cst_42 = arith.constant dense<0.000000e+00> : vector<8x8xf32>
    %170 = tpu.matmul %169, %8, %cst_42 {dimension_numbers = #tpu.dot_dimension_numbers<[1], [0], [0], [1], [0, 0, 1, 1], [], []>} : vector<8x32xf32>, vector<32x8xf32>, vector<8x8xf32> -> vector<8x8xf32>
    %c0_43 = arith.constant 0 : index
    %c0_44 = arith.constant 0 : index
    %171 = vector.load %arg8[%c0_43, %c0_44] : memref<8x128xf32, #tpu.memory_space<vmem>>, vector<8x128xf32>
    %cst_45 = arith.constant dense<0.000000e+00> : vector<8x128xf32>
    %172 = tpu.matmul %170, %171, %cst_45 {dimension_numbers = #tpu.dot_dimension_numbers<[1], [0], [0], [1], [0, 0, 1, 1], [], []>} : vector<8x8xf32>, vector<8x128xf32>, vector<8x128xf32> -> vector<8x128xf32>
    %c1_46 = arith.constant 1 : index
    %c0_47 = arith.constant 0 : index
    %173 = vector.load %arg1[%c1_46, %c0_47] : memref<2x8xf32, #tpu.memory_space<vmem>>, vector<1x8xf32>
    %c1_48 = arith.constant 1 : index
    %c0_49 = arith.constant 0 : index
    %174 = vector.load %arg2[%c1_48, %c0_49] : memref<2x32xf32, #tpu.memory_space<vmem>>, vector<1x32xf32>
    %c0_50 = arith.constant 0 : index
    %c0_51 = arith.constant 0 : index
    %175 = vector.load %arg9[%c0_50, %c0_51] : memref<8x128xf32, #tpu.memory_space<vmem>>, vector<8x128xf32>
    %c0_52 = arith.constant 0 : index
    %c0_53 = arith.constant 0 : index
    %176 = vector.load %arg10[%c0_52, %c0_53] : memref<32x128xf32, #tpu.memory_space<vmem>>, vector<32x128xf32>
    %c0_54 = arith.constant 0 : index
    %c0_55 = arith.constant 0 : index
    %177 = vector.load %arg11[%c0_54, %c0_55] : memref<1x128xf32, #tpu.memory_space<vmem>>, vector<1x128xf32>
    %c0_56 = arith.constant 0 : index
    %c0_57 = arith.constant 0 : index
    %178 = vector.load %arg12[%c0_56, %c0_57] : memref<32x8xf32, #tpu.memory_space<vmem>>, vector<32x8xf32>
    %cst_58 = arith.constant dense<0.000000e+00> : vector<1x128xf32>
    %179 = tpu.matmul %173, %175, %cst_58 {dimension_numbers = #tpu.dot_dimension_numbers<[1], [0], [0], [1], [0, 0, 1, 1], [], []>} : vector<1x8xf32>, vector<8x128xf32>, vector<1x128xf32> -> vector<1x128xf32>
    %180 = vector.extract_strided_slice %172 {offsets = [0, 0], sizes = [1, 128], strides = [1, 1]} : vector<8x128xf32> to vector<1x128xf32>
    %181 = arith.addf %180, %179 : vector<1x128xf32>
    %182 = arith.addf %181, %177 : vector<1x128xf32>
    %183 = arith.negf %182 : vector<1x128xf32>
    %184 = math.exp %183 : vector<1x128xf32>
    %cst_59 = arith.constant 1.000000e+00 : f32
    %185 = vector.broadcast %cst_59 : f32 to vector<1x128xf32>
    %186 = arith.addf %185, %184 : vector<1x128xf32>
    %187 = arith.divf %185, %186 : vector<1x128xf32>
    %188 = math.tanh %182 : vector<1x128xf32>
    %189 = vector.extract_strided_slice %187 {offsets = [0, 0], sizes = [1, 32], strides = [1, 1]} : vector<1x128xf32> to vector<1x32xf32>
    %190 = vector.extract_strided_slice %187 {offsets = [0, 32], sizes = [1, 32], strides = [1, 1]} : vector<1x128xf32> to vector<1x32xf32>
    %191 = vector.extract_strided_slice %188 {offsets = [0, 64], sizes = [1, 32], strides = [1, 1]} : vector<1x128xf32> to vector<1x32xf32>
    %192 = vector.extract_strided_slice %187 {offsets = [0, 96], sizes = [1, 32], strides = [1, 1]} : vector<1x128xf32> to vector<1x32xf32>
    %193 = arith.mulf %190, %174 : vector<1x32xf32>
    %194 = arith.mulf %189, %191 : vector<1x32xf32>
    %195 = arith.addf %193, %194 : vector<1x32xf32>
    %196 = math.tanh %195 : vector<1x32xf32>
    %197 = arith.mulf %192, %196 : vector<1x32xf32>
    %c0_60 = arith.constant 0 : index
    %c0_61 = arith.constant 0 : index
    %198 = vector.load %arg18[%c0_60, %c0_61] : memref<8x32xf32, #tpu.memory_space<vmem>>, vector<1x32xf32>
    tpu.vector_store %arg18[%c0_60, %c0_61], %197 {strides = array<i32>} : memref<8x32xf32, #tpu.memory_space<vmem>>, vector<1x32xf32>,
    %cst_62 = arith.constant dense<0.000000e+00> : vector<1x128xf32>
    %199 = tpu.matmul %197, %176, %cst_62 {dimension_numbers = #tpu.dot_dimension_numbers<[1], [0], [0], [1], [0, 0, 1, 1], [], []>} : vector<1x32xf32>, vector<32x128xf32>, vector<1x128xf32> -> vector<1x128xf32>
    %200 = vector.extract_strided_slice %172 {offsets = [1, 0], sizes = [1, 128], strides = [1, 1]} : vector<8x128xf32> to vector<1x128xf32>
    %201 = arith.addf %200, %199 : vector<1x128xf32>
    %202 = arith.addf %201, %177 : vector<1x128xf32>
    %203 = arith.negf %202 : vector<1x128xf32>
    %204 = math.exp %203 : vector<1x128xf32>
    %cst_63 = arith.constant 1.000000e+00 : f32
    %205 = vector.broadcast %cst_63 : f32 to vector<1x128xf32>
    %206 = arith.addf %205, %204 : vector<1x128xf32>
    %207 = arith.divf %205, %206 : vector<1x128xf32>
    %208 = math.tanh %202 : vector<1x128xf32>
    %209 = vector.extract_strided_slice %207 {offsets = [0, 0], sizes = [1, 32], strides = [1, 1]} : vector<1x128xf32> to vector<1x32xf32>
    %210 = vector.extract_strided_slice %207 {offsets = [0, 32], sizes = [1, 32], strides = [1, 1]} : vector<1x128xf32> to vector<1x32xf32>
    %211 = vector.extract_strided_slice %208 {offsets = [0, 64], sizes = [1, 32], strides = [1, 1]} : vector<1x128xf32> to vector<1x32xf32>
    %212 = vector.extract_strided_slice %207 {offsets = [0, 96], sizes = [1, 32], strides = [1, 1]} : vector<1x128xf32> to vector<1x32xf32>
    %213 = arith.mulf %210, %195 : vector<1x32xf32>
    %214 = arith.mulf %209, %211 : vector<1x32xf32>
    %215 = arith.addf %213, %214 : vector<1x32xf32>
    %216 = math.tanh %215 : vector<1x32xf32>
    %217 = arith.mulf %212, %216 : vector<1x32xf32>
    %c1_64 = arith.constant 1 : index
    %c0_65 = arith.constant 0 : index
    %218 = vector.load %arg18[%c1_64, %c0_65] : memref<8x32xf32, #tpu.memory_space<vmem>>, vector<1x32xf32>
    tpu.vector_store %arg18[%c1_64, %c0_65], %217 {strides = array<i32>} : memref<8x32xf32, #tpu.memory_space<vmem>>, vector<1x32xf32>,
    %cst_66 = arith.constant dense<0.000000e+00> : vector<1x128xf32>
    %219 = tpu.matmul %217, %176, %cst_66 {dimension_numbers = #tpu.dot_dimension_numbers<[1], [0], [0], [1], [0, 0, 1, 1], [], []>} : vector<1x32xf32>, vector<32x128xf32>, vector<1x128xf32> -> vector<1x128xf32>
    %220 = vector.extract_strided_slice %172 {offsets = [2, 0], sizes = [1, 128], strides = [1, 1]} : vector<8x128xf32> to vector<1x128xf32>
    %221 = arith.addf %220, %219 : vector<1x128xf32>
    %222 = arith.addf %221, %177 : vector<1x128xf32>
    %223 = arith.negf %222 : vector<1x128xf32>
    %224 = math.exp %223 : vector<1x128xf32>
    %cst_67 = arith.constant 1.000000e+00 : f32
    %225 = vector.broadcast %cst_67 : f32 to vector<1x128xf32>
    %226 = arith.addf %225, %224 : vector<1x128xf32>
    %227 = arith.divf %225, %226 : vector<1x128xf32>
    %228 = math.tanh %222 : vector<1x128xf32>
    %229 = vector.extract_strided_slice %227 {offsets = [0, 0], sizes = [1, 32], strides = [1, 1]} : vector<1x128xf32> to vector<1x32xf32>
    %230 = vector.extract_strided_slice %227 {offsets = [0, 32], sizes = [1, 32], strides = [1, 1]} : vector<1x128xf32> to vector<1x32xf32>
    %231 = vector.extract_strided_slice %228 {offsets = [0, 64], sizes = [1, 32], strides = [1, 1]} : vector<1x128xf32> to vector<1x32xf32>
    %232 = vector.extract_strided_slice %227 {offsets = [0, 96], sizes = [1, 32], strides = [1, 1]} : vector<1x128xf32> to vector<1x32xf32>
    %233 = arith.mulf %230, %215 : vector<1x32xf32>
    %234 = arith.mulf %229, %231 : vector<1x32xf32>
    %235 = arith.addf %233, %234 : vector<1x32xf32>
    %236 = math.tanh %235 : vector<1x32xf32>
    %237 = arith.mulf %232, %236 : vector<1x32xf32>
    %c2_68 = arith.constant 2 : index
    %c0_69 = arith.constant 0 : index
    %238 = vector.load %arg18[%c2_68, %c0_69] : memref<8x32xf32, #tpu.memory_space<vmem>>, vector<1x32xf32>
    tpu.vector_store %arg18[%c2_68, %c0_69], %237 {strides = array<i32>} : memref<8x32xf32, #tpu.memory_space<vmem>>, vector<1x32xf32>,
    %cst_70 = arith.constant dense<0.000000e+00> : vector<1x128xf32>
    %239 = tpu.matmul %237, %176, %cst_70 {dimension_numbers = #tpu.dot_dimension_numbers<[1], [0], [0], [1], [0, 0, 1, 1], [], []>} : vector<1x32xf32>, vector<32x128xf32>, vector<1x128xf32> -> vector<1x128xf32>
    %240 = vector.extract_strided_slice %172 {offsets = [3, 0], sizes = [1, 128], strides = [1, 1]} : vector<8x128xf32> to vector<1x128xf32>
    %241 = arith.addf %240, %239 : vector<1x128xf32>
    %242 = arith.addf %241, %177 : vector<1x128xf32>
    %243 = arith.negf %242 : vector<1x128xf32>
    %244 = math.exp %243 : vector<1x128xf32>
    %cst_71 = arith.constant 1.000000e+00 : f32
    %245 = vector.broadcast %cst_71 : f32 to vector<1x128xf32>
    %246 = arith.addf %245, %244 : vector<1x128xf32>
    %247 = arith.divf %245, %246 : vector<1x128xf32>
    %248 = math.tanh %242 : vector<1x128xf32>
    %249 = vector.extract_strided_slice %247 {offsets = [0, 0], sizes = [1, 32], strides = [1, 1]} : vector<1x128xf32> to vector<1x32xf32>
    %250 = vector.extract_strided_slice %247 {offsets = [0, 32], sizes = [1, 32], strides = [1, 1]} : vector<1x128xf32> to vector<1x32xf32>
    %251 = vector.extract_strided_slice %248 {offsets = [0, 64], sizes = [1, 32], strides = [1, 1]} : vector<1x128xf32> to vector<1x32xf32>
    %252 = vector.extract_strided_slice %247 {offsets = [0, 96], sizes = [1, 32], strides = [1, 1]} : vector<1x128xf32> to vector<1x32xf32>
    %253 = arith.mulf %250, %235 : vector<1x32xf32>
    %254 = arith.mulf %249, %251 : vector<1x32xf32>
    %255 = arith.addf %253, %254 : vector<1x32xf32>
    %256 = math.tanh %255 : vector<1x32xf32>
    %257 = arith.mulf %252, %256 : vector<1x32xf32>
    %c3_72 = arith.constant 3 : index
    %c0_73 = arith.constant 0 : index
    %258 = vector.load %arg18[%c3_72, %c0_73] : memref<8x32xf32, #tpu.memory_space<vmem>>, vector<1x32xf32>
    tpu.vector_store %arg18[%c3_72, %c0_73], %257 {strides = array<i32>} : memref<8x32xf32, #tpu.memory_space<vmem>>, vector<1x32xf32>,
    %cst_74 = arith.constant dense<0.000000e+00> : vector<1x128xf32>
    %259 = tpu.matmul %257, %176, %cst_74 {dimension_numbers = #tpu.dot_dimension_numbers<[1], [0], [0], [1], [0, 0, 1, 1], [], []>} : vector<1x32xf32>, vector<32x128xf32>, vector<1x128xf32> -> vector<1x128xf32>
    %260 = vector.extract_strided_slice %172 {offsets = [4, 0], sizes = [1, 128], strides = [1, 1]} : vector<8x128xf32> to vector<1x128xf32>
    %261 = arith.addf %260, %259 : vector<1x128xf32>
    %262 = arith.addf %261, %177 : vector<1x128xf32>
    %263 = arith.negf %262 : vector<1x128xf32>
    %264 = math.exp %263 : vector<1x128xf32>
    %cst_75 = arith.constant 1.000000e+00 : f32
    %265 = vector.broadcast %cst_75 : f32 to vector<1x128xf32>
    %266 = arith.addf %265, %264 : vector<1x128xf32>
    %267 = arith.divf %265, %266 : vector<1x128xf32>
    %268 = math.tanh %262 : vector<1x128xf32>
    %269 = vector.extract_strided_slice %267 {offsets = [0, 0], sizes = [1, 32], strides = [1, 1]} : vector<1x128xf32> to vector<1x32xf32>
    %270 = vector.extract_strided_slice %267 {offsets = [0, 32], sizes = [1, 32], strides = [1, 1]} : vector<1x128xf32> to vector<1x32xf32>
    %271 = vector.extract_strided_slice %268 {offsets = [0, 64], sizes = [1, 32], strides = [1, 1]} : vector<1x128xf32> to vector<1x32xf32>
    %272 = vector.extract_strided_slice %267 {offsets = [0, 96], sizes = [1, 32], strides = [1, 1]} : vector<1x128xf32> to vector<1x32xf32>
    %273 = arith.mulf %270, %255 : vector<1x32xf32>
    %274 = arith.mulf %269, %271 : vector<1x32xf32>
    %275 = arith.addf %273, %274 : vector<1x32xf32>
    %276 = math.tanh %275 : vector<1x32xf32>
    %277 = arith.mulf %272, %276 : vector<1x32xf32>
    %c4_76 = arith.constant 4 : index
    %c0_77 = arith.constant 0 : index
    %278 = vector.load %arg18[%c4_76, %c0_77] : memref<8x32xf32, #tpu.memory_space<vmem>>, vector<1x32xf32>
    tpu.vector_store %arg18[%c4_76, %c0_77], %277 {strides = array<i32>} : memref<8x32xf32, #tpu.memory_space<vmem>>, vector<1x32xf32>,
    %cst_78 = arith.constant dense<0.000000e+00> : vector<1x128xf32>
    %279 = tpu.matmul %277, %176, %cst_78 {dimension_numbers = #tpu.dot_dimension_numbers<[1], [0], [0], [1], [0, 0, 1, 1], [], []>} : vector<1x32xf32>, vector<32x128xf32>, vector<1x128xf32> -> vector<1x128xf32>
    %280 = vector.extract_strided_slice %172 {offsets = [5, 0], sizes = [1, 128], strides = [1, 1]} : vector<8x128xf32> to vector<1x128xf32>
    %281 = arith.addf %280, %279 : vector<1x128xf32>
    %282 = arith.addf %281, %177 : vector<1x128xf32>
    %283 = arith.negf %282 : vector<1x128xf32>
    %284 = math.exp %283 : vector<1x128xf32>
    %cst_79 = arith.constant 1.000000e+00 : f32
    %285 = vector.broadcast %cst_79 : f32 to vector<1x128xf32>
    %286 = arith.addf %285, %284 : vector<1x128xf32>
    %287 = arith.divf %285, %286 : vector<1x128xf32>
    %288 = math.tanh %282 : vector<1x128xf32>
    %289 = vector.extract_strided_slice %287 {offsets = [0, 0], sizes = [1, 32], strides = [1, 1]} : vector<1x128xf32> to vector<1x32xf32>
    %290 = vector.extract_strided_slice %287 {offsets = [0, 32], sizes = [1, 32], strides = [1, 1]} : vector<1x128xf32> to vector<1x32xf32>
    %291 = vector.extract_strided_slice %288 {offsets = [0, 64], sizes = [1, 32], strides = [1, 1]} : vector<1x128xf32> to vector<1x32xf32>
    %292 = vector.extract_strided_slice %287 {offsets = [0, 96], sizes = [1, 32], strides = [1, 1]} : vector<1x128xf32> to vector<1x32xf32>
    %293 = arith.mulf %290, %275 : vector<1x32xf32>
    %294 = arith.mulf %289, %291 : vector<1x32xf32>
    %295 = arith.addf %293, %294 : vector<1x32xf32>
    %296 = math.tanh %295 : vector<1x32xf32>
    %297 = arith.mulf %292, %296 : vector<1x32xf32>
    %c5_80 = arith.constant 5 : index
    %c0_81 = arith.constant 0 : index
    %298 = vector.load %arg18[%c5_80, %c0_81] : memref<8x32xf32, #tpu.memory_space<vmem>>, vector<1x32xf32>
    tpu.vector_store %arg18[%c5_80, %c0_81], %297 {strides = array<i32>} : memref<8x32xf32, #tpu.memory_space<vmem>>, vector<1x32xf32>,
    %cst_82 = arith.constant dense<0.000000e+00> : vector<1x128xf32>
    %299 = tpu.matmul %297, %176, %cst_82 {dimension_numbers = #tpu.dot_dimension_numbers<[1], [0], [0], [1], [0, 0, 1, 1], [], []>} : vector<1x32xf32>, vector<32x128xf32>, vector<1x128xf32> -> vector<1x128xf32>
    %300 = vector.extract_strided_slice %172 {offsets = [6, 0], sizes = [1, 128], strides = [1, 1]} : vector<8x128xf32> to vector<1x128xf32>
    %301 = arith.addf %300, %299 : vector<1x128xf32>
    %302 = arith.addf %301, %177 : vector<1x128xf32>
    %303 = arith.negf %302 : vector<1x128xf32>
    %304 = math.exp %303 : vector<1x128xf32>
    %cst_83 = arith.constant 1.000000e+00 : f32
    %305 = vector.broadcast %cst_83 : f32 to vector<1x128xf32>
    %306 = arith.addf %305, %304 : vector<1x128xf32>
    %307 = arith.divf %305, %306 : vector<1x128xf32>
    %308 = math.tanh %302 : vector<1x128xf32>
    %309 = vector.extract_strided_slice %307 {offsets = [0, 0], sizes = [1, 32], strides = [1, 1]} : vector<1x128xf32> to vector<1x32xf32>
    %310 = vector.extract_strided_slice %307 {offsets = [0, 32], sizes = [1, 32], strides = [1, 1]} : vector<1x128xf32> to vector<1x32xf32>
    %311 = vector.extract_strided_slice %308 {offsets = [0, 64], sizes = [1, 32], strides = [1, 1]} : vector<1x128xf32> to vector<1x32xf32>
    %312 = vector.extract_strided_slice %307 {offsets = [0, 96], sizes = [1, 32], strides = [1, 1]} : vector<1x128xf32> to vector<1x32xf32>
    %313 = arith.mulf %310, %295 : vector<1x32xf32>
    %314 = arith.mulf %309, %311 : vector<1x32xf32>
    %315 = arith.addf %313, %314 : vector<1x32xf32>
    %316 = math.tanh %315 : vector<1x32xf32>
    %317 = arith.mulf %312, %316 : vector<1x32xf32>
    %c6_84 = arith.constant 6 : index
    %c0_85 = arith.constant 0 : index
    %318 = vector.load %arg18[%c6_84, %c0_85] : memref<8x32xf32, #tpu.memory_space<vmem>>, vector<1x32xf32>
    tpu.vector_store %arg18[%c6_84, %c0_85], %317 {strides = array<i32>} : memref<8x32xf32, #tpu.memory_space<vmem>>, vector<1x32xf32>,
    %cst_86 = arith.constant dense<0.000000e+00> : vector<1x128xf32>
    %319 = tpu.matmul %317, %176, %cst_86 {dimension_numbers = #tpu.dot_dimension_numbers<[1], [0], [0], [1], [0, 0, 1, 1], [], []>} : vector<1x32xf32>, vector<32x128xf32>, vector<1x128xf32> -> vector<1x128xf32>
    %320 = vector.extract_strided_slice %172 {offsets = [7, 0], sizes = [1, 128], strides = [1, 1]} : vector<8x128xf32> to vector<1x128xf32>
    %321 = arith.addf %320, %319 : vector<1x128xf32>
    %322 = arith.addf %321, %177 : vector<1x128xf32>
    %323 = arith.negf %322 : vector<1x128xf32>
    %324 = math.exp %323 : vector<1x128xf32>
    %cst_87 = arith.constant 1.000000e+00 : f32
    %325 = vector.broadcast %cst_87 : f32 to vector<1x128xf32>
    %326 = arith.addf %325, %324 : vector<1x128xf32>
    %327 = arith.divf %325, %326 : vector<1x128xf32>
    %328 = math.tanh %322 : vector<1x128xf32>
    %329 = vector.extract_strided_slice %327 {offsets = [0, 0], sizes = [1, 32], strides = [1, 1]} : vector<1x128xf32> to vector<1x32xf32>
    %330 = vector.extract_strided_slice %327 {offsets = [0, 32], sizes = [1, 32], strides = [1, 1]} : vector<1x128xf32> to vector<1x32xf32>
    %331 = vector.extract_strided_slice %328 {offsets = [0, 64], sizes = [1, 32], strides = [1, 1]} : vector<1x128xf32> to vector<1x32xf32>
    %332 = vector.extract_strided_slice %327 {offsets = [0, 96], sizes = [1, 32], strides = [1, 1]} : vector<1x128xf32> to vector<1x32xf32>
    %333 = arith.mulf %330, %315 : vector<1x32xf32>
    %334 = arith.mulf %329, %331 : vector<1x32xf32>
    %335 = arith.addf %333, %334 : vector<1x32xf32>
    %336 = math.tanh %335 : vector<1x32xf32>
    %337 = arith.mulf %332, %336 : vector<1x32xf32>
    %c7_88 = arith.constant 7 : index
    %c0_89 = arith.constant 0 : index
    %338 = vector.load %arg18[%c7_88, %c0_89] : memref<8x32xf32, #tpu.memory_space<vmem>>, vector<1x32xf32>
    tpu.vector_store %arg18[%c7_88, %c0_89], %337 {strides = array<i32>} : memref<8x32xf32, #tpu.memory_space<vmem>>, vector<1x32xf32>,
    %c0_90 = arith.constant 0 : index
    %c0_91 = arith.constant 0 : index
    %339 = vector.load %arg18[%c0_90, %c0_91] : memref<8x32xf32, #tpu.memory_space<vmem>>, vector<8x32xf32>
    %cst_92 = arith.constant dense<0.000000e+00> : vector<8x8xf32>
    %340 = tpu.matmul %339, %178, %cst_92 {dimension_numbers = #tpu.dot_dimension_numbers<[1], [0], [0], [1], [0, 0, 1, 1], [], []>} : vector<8x32xf32>, vector<32x8xf32>, vector<8x8xf32> -> vector<8x8xf32>
    %c0_93 = arith.constant 0 : index
    %c0_94 = arith.constant 0 : index
    %341 = vector.load %arg13[%c0_93, %c0_94] : memref<8x128xf32, #tpu.memory_space<vmem>>, vector<8x128xf32>
    %cst_95 = arith.constant dense<0.000000e+00> : vector<8x128xf32>
    %342 = tpu.matmul %340, %341, %cst_95 {dimension_numbers = #tpu.dot_dimension_numbers<[1], [0], [0], [1], [0, 0, 1, 1], [], []>} : vector<8x8xf32>, vector<8x128xf32>, vector<8x128xf32> -> vector<8x128xf32>
    %c0_96 = arith.constant 0 : index
    %c0_97 = arith.constant 0 : index
    %343 = vector.load %arg14[%c0_96, %c0_97] : memref<1x128xf32, #tpu.memory_space<vmem>>, vector<1x128xf32>
    %344 = vector.broadcast %343 : vector<1x128xf32> to vector<8x128xf32>
    %345 = arith.addf %342, %344 : vector<8x128xf32>
    %346 = tpu.iota {dimensions = array<i32: 1>} : vector<8x128xi32>
    %c5_i32 = arith.constant 5 : i32
    %347 = vector.broadcast %c5_i32 : i32 to vector<8x128xi32>
    %348 = arith.cmpi slt, %346, %347 : vector<8x128xi32>
    %cst_98 = arith.constant -1.000000e+30 : f32
    %349 = vector.broadcast %cst_98 : f32 to vector<8x128xf32>
    %350 = arith.select %348, %345, %349 : vector<8x128xi1>, vector<8x128xf32>
    %cst_99 = arith.constant dense<0xFF800000> : vector<8xf32>
    %351 = vector.multi_reduction <maximumf>, %350, %cst_99 [1] : vector<8x128xf32> to vector<8xf32>
    %352 = vector.shape_cast %351 : vector<8xf32> to vector<8x1xf32>
    %c5_i32_100 = arith.constant 5 : i32
    %353 = vector.broadcast %c5_i32_100 : i32 to vector<8x128xi32>
    %354 = arith.cmpi slt, %346, %353 : vector<8x128xi32>
    %355 = vector.broadcast %352 : vector<8x1xf32> to vector<8x128xf32>
    %356 = arith.subf %350, %355 : vector<8x128xf32>
    %357 = math.exp %356 : vector<8x128xf32>
    %cst_101 = arith.constant 0.000000e+00 : f32
    %358 = vector.broadcast %cst_101 : f32 to vector<8x128xf32>
    %359 = arith.select %354, %357, %358 : vector<8x128xi1>, vector<8x128xf32>
    %cst_102 = arith.constant dense<0.000000e+00> : vector<8xf32>
    %360 = vector.multi_reduction <add>, %359, %cst_102 [1] : vector<8x128xf32> to vector<8xf32>
    %361 = vector.shape_cast %360 : vector<8xf32> to vector<8x1xf32>
    %362 = vector.broadcast %361 : vector<8x1xf32> to vector<8x128xf32>
    %363 = arith.divf %359, %362 : vector<8x128xf32>
    %c5_i32_103 = arith.constant 5 : i32
    %364 = vector.broadcast %c5_i32_103 : i32 to vector<8x128xi32>
    %365 = arith.cmpi slt, %346, %364 : vector<8x128xi32>
    %c45_i32 = arith.constant 45 : i32
    %366 = vector.broadcast %c45_i32 : i32 to vector<8x128xi32>
    %367 = arith.cmpi slt, %346, %366 : vector<8x128xi32>
    %c85_i32 = arith.constant 85 : i32
    %368 = vector.broadcast %c85_i32 : i32 to vector<8x128xi32>
    %369 = arith.cmpi slt, %346, %368 : vector<8x128xi32>
    %370 = math.exp %345 : vector<8x128xf32>
    %cst_104 = arith.constant 0.000000e+00 : f32
    %371 = vector.broadcast %cst_104 : f32 to vector<8x128xf32>
    %372 = arith.select %369, %370, %371 : vector<8x128xi1>, vector<8x128xf32>
    %373 = arith.select %367, %345, %372 : vector<8x128xi1>, vector<8x128xf32>
    %374 = arith.select %365, %363, %373 : vector<8x128xi1>, vector<8x128xf32>
    %c0_105 = arith.constant 0 : index
    %c0_106 = arith.constant 0 : index
    %375 = vector.load %arg15[%c0_105, %c0_106] : memref<8x128xf32, #tpu.memory_space<vmem>>, vector<8x128xf32>
    tpu.vector_store %arg15[%c0_105, %c0_106], %374 {strides = array<i32>} : memref<8x128xf32, #tpu.memory_space<vmem>>, vector<8x128xf32>,
    %376 = vector.extract_strided_slice %170 {offsets = [7, 0], sizes = [1, 8], strides = [1, 1]} : vector<8x8xf32> to vector<1x8xf32>
    %c0_107 = arith.constant 0 : index
    %c0_108 = arith.constant 0 : index
    %377 = vector.load %arg16[%c0_107, %c0_108] : memref<2x8xf32, #tpu.memory_space<vmem>>, vector<1x8xf32>
    tpu.vector_store %arg16[%c0_107, %c0_108], %376 {strides = array<i32>} : memref<2x8xf32, #tpu.memory_space<vmem>>, vector<1x8xf32>,
    %378 = vector.extract_strided_slice %340 {offsets = [7, 0], sizes = [1, 8], strides = [1, 1]} : vector<8x8xf32> to vector<1x8xf32>
    %c1_109 = arith.constant 1 : index
    %c0_110 = arith.constant 0 : index
    %379 = vector.load %arg16[%c1_109, %c0_110] : memref<2x8xf32, #tpu.memory_space<vmem>>, vector<1x8xf32>
    tpu.vector_store %arg16[%c1_109, %c0_110], %378 {strides = array<i32>} : memref<2x8xf32, #tpu.memory_space<vmem>>, vector<1x8xf32>,
    %c0_111 = arith.constant 0 : index
    %c0_112 = arith.constant 0 : index
    %380 = vector.load %arg17[%c0_111, %c0_112] : memref<2x32xf32, #tpu.memory_space<vmem>>, vector<1x32xf32>
    tpu.vector_store %arg17[%c0_111, %c0_112], %165 {strides = array<i32>} : memref<2x32xf32, #tpu.memory_space<vmem>>, vector<1x32xf32>,
    %c1_113 = arith.constant 1 : index
    %c0_114 = arith.constant 0 : index
    %381 = vector.load %arg17[%c1_113, %c0_114] : memref<2x32xf32, #tpu.memory_space<vmem>>, vector<1x32xf32>
    tpu.vector_store %arg17[%c1_113, %c0_114], %335 {strides = array<i32>} : memref<2x32xf32, #tpu.memory_space<vmem>>, vector<1x32xf32>,
    return
  }
}

</mosaic_0001>

<bundles_post_ra>
// kernel: mdnrnn_forward.1
= control target key start
LH: loop header
LB: loop body
LE: loop exit
PB: predicated region body
PF: predicated region fallthrough
CT: control target
= control target key end

     0   :  { %s3493_s0 = inlined_call_operand.vmem [shape: f32[8,16], index: 0, kind: input, shape index: {}]   ;;  %s3494_s1 = inlined_call_operand.vmem [shape: f32[2,8], index: 1, kind: input, shape index: {}]   ;;  %s3495_s2 = inlined_call_operand.vmem [shape: f32[2,32], index: 2, kind: input, shape index: {}]   ;;  %s3496_s3 = inlined_call_operand.vmem [shape: f32[16,128], index: 3, kind: input, shape index: {}]   ;;  %s3497_s4 = inlined_call_operand.vmem [shape: f32[8,128], index: 4, kind: input, shape index: {}]   ;;  %s3498_s5 = inlined_call_operand.vmem [shape: f32[32,128], index: 5, kind: input, shape index: {}]   ;;  %s3499_s6 = inlined_call_operand.vmem [shape: f32[1,128], index: 6, kind: input, shape index: {}]   ;;  %s3500_s7 = inlined_call_operand.vmem [shape: f32[32,8], index: 7, kind: input, shape index: {}]   ;;  %s3501_s8 = inlined_call_operand.vmem [shape: f32[8,128], index: 8, kind: input, shape index: {}]   ;;  %s3502_s9 = inlined_call_operand.vmem [shape: f32[8,128], index: 9, kind: input, shape index: {}]   ;;  %s3503_s10 = inlined_call_operand.vmem [shape: f32[32,128], index: 10, kind: input, shape index: {}]   ;;  %s3504_s11 = inlined_call_operand.vmem [shape: f32[1,128], index: 11, kind: input, shape index: {}]   ;;  %s3505_s12 = inlined_call_operand.vmem [shape: f32[32,8], index: 12, kind: input, shape index: {}]   ;;  %s3506_s13 = inlined_call_operand.vmem [shape: f32[8,128], index: 13, kind: input, shape index: {}]   ;;  %s3507_s14 = inlined_call_operand.vmem [shape: f32[1,128], index: 14, kind: input, shape index: {}]   ;;  %s3508_s15 = inlined_call_operand.vmem [shape: f32[8,128], index: 15, kind: output, shape index: {0}]   ;;  %s3509_s16 = inlined_call_operand.hbm [shape: f32[2,8], index: 16, kind: output, shape index: {1}]   ;;  %s3510_s17 = inlined_call_operand.hbm [shape: f32[2,32], index: 17, kind: output, shape index: {2}]  }
   0x1   :  { %3512 = sst [smem:[#allocation9_spill]] %s3493_s0 }
   0x2   :  { %3513 = sst [smem:[#allocation10_spill]] %s3494_s1 }
   0x3   :  { %23 = vsyncpa [#allocation4], 0  ;;  %v56_v0 = vld [vmem:[%s3496_s3] sm:$0xff]  ;;  %v57_v1 = vld [vmem:[%s3496_s3 + $0x8] sm:$0xff]  ;;  %v2947_v3 = vmov 0.0|0.0   ;;  %v2948_v5 = vmov 0.0  }
   0x4   :  { %v134_v2 = vld [vmem:[%s3497_s4] sm:$0xff]  ;;  %2658 = vmatprep.subr.bf16.mxu0 %v2947_v3  ;;  %v2659_v4 = vpack.c.bf16 %v57_v1, %v56_v0  ;;  %2462 = vmatprep.subr.mxu1 %v2948_v5  ;;  %s3514_s18 = sld [smem:[#allocation10_spill]]  ;;  %vm144_vm0 = vcmask 64512   ;;  %vm2949_vm1 = vmmov 0  }
   0x5   :  { %2463 = vmatpush3.msra.mxu1 %v134_v2  ;;  %2464 = vmatprep.mubr.msk.f32.mxu1 %vm2949_vm1, %v2948_v5 }
   0xa   :  { %v132_v6 = vld [vmem:[%s3514_s18] sm:$0x1] }
   0xb   :  { %24 = vsyncpa [#allocation6], 0  ;;  %2660 = vmatpush3.bf16.msra.mxu0 %v2659_v4  ;;  %2459 = vmatprep.mubr.msk.f32.mxu0 %vm2949_vm1, %v2948_v5  ;;  %s3515_s19 = sld [smem:[#allocation9_spill]]  ;;  %vm58_vm2 = vcmask 130048   ;;  %v139_v11 = vld [vmem:[%s3499_s6] sm:$0x1]  ;;  %v332_v37 = vlaneseq }
   0xc   :  { %2465 = vmatmul.mubr.msk.f32.vlgmr.msra.gmra.mrb[0].mxu1 %vm144_vm0, %v132_v6  ;;  %2661 = vmatprep.subr.bf16.mxu1 %v2947_v3  ;;  %s2950_s21 = smov 64   ;;  %v133_v16 = vld [vmem:[%s3495_s2] sm:$0x1]  ;;  %s2951_s24 = smov 32   ;;  %v136_v28 = vld [vmem:[%s3498_s5 + $0x8] sm:$0xff]  ;;  %v137_v29 = vld [vmem:[%s3498_s5 + $0x10] sm:$0xff] }
   0xd   :  { %2475 = vmatprep.mubr.msk.f32.mxu1 %vm2949_vm1, %v2948_v5  ;;  %2667 = vmatprep.subr.bf16.mxu0 %v2947_v3  ;;  %v135_v27 = vld [vmem:[%s3498_s5] sm:$0xff]  ;;  %v138_v31 = vld [vmem:[%s3498_s5 + $0x18] sm:$0xff]  ;;  %vm252_vm3 = vcmask 253952   ;;  %vm254_vm4 = vcmask 261120   ;;  %v3120_v38 = vshrl.u32 %v332_v37, 7  ;;  %vm369_vm5 = vcmask 254977  }
   0xe   :  { %v3094_v30 = vpack.c.bf16 %v136_v28, %v135_v27  ;;  %v3100_v32 = vpack.c.bf16 %v138_v31, %v137_v29  ;;  %vm595_vm6 = vcmask 257027   ;;  %vm821_vm7 = vcmask 259077  }
   0xf   :  { %v334_v39 = vsub.s32 0, %v3120_v38  ;;  %vm482_vm8 = vcmask 256002   ;;  %vm708_vm9 = vcmask 258052   ;;  %vm934_vm10 = vcmask 260102  }
  0x10   :  { %2663 = vmatpush3.bf16.msra.mxu1 %v3094_v30  ;;  %vm1047_vm11 = vcmask 261127   ;;  %vm2281_vm12 = vcmask 64519  }
  0x11   :  { %v55_v7 = vld [vmem:[%s3515_s19] sm:$0xff]  ;;  %2664 = vmatprep.subr.bf16.mxu1 %v2947_v3  ;;  %v3125_v41 = vrot.slane %v139_v11, %v334_v39 }
  0x12   :  { %2460 = vmatmul.mubr.msk.f32.vlgmr.msra.gmra.mrb[0].mxu0 %vm58_vm2, %v55_v7 }
  0x13   :  { %2486 = vmatprep.mubr.msk.f32.mxu0 %vm2949_vm1, %v2948_v5  ;;  %2669 = vmatpush3.bf16.msra.mxu0 %v3094_v30 }
  0x14   :  { %2670 = vmatprep.subr.bf16.mxu0 %v2947_v3  ;;  %2666 = vmatpush3.bf16.msra.mxu1 %v3100_v32 }
  0x15   :  { %2673 = vmatprep.subr.bf16.mxu1 %v2947_v3 }
  0x17   :  { %2672 = vmatpush3.bf16.msra.mxu0 %v3100_v32 }
  0x18   :  { %2679 = vmatprep.subr.bf16.mxu0 %v2947_v3 }
  0xdf   :  { %v214_v8 = vpop.f32.mrb[0].mxu1 }
  0xe0   :  { %v2466_v9 = vpop.f32.mrb[1].mxu1 }
  0xe5   :  { %v3073_v10 = vpop.f32.mrb[0].mxu0 }
  0xe6   :  { %v2461_v12 = vpop.f32.mrb[1].mxu0  ;;  %v218_v13 = vadd.f32 %v214_v8, %v3073_v10 }
  0xe8   :  { %v219_v14 = vadd.f32 %v218_v13, %v139_v11 }
  0xea   :  { %2765 = vtanh.f32 %v219_v14  ;;  %v2328_v17 = vmul.f32 -1.442695, %v219_v14 }
  0xec   :  { %2767 = vpow2.f32 %v2328_v17 }
  0xf4   :  { %v2766_v15 = vpop.eup %2765 }
  0xf5   :  { %233 = vrot.lane.b32.xlu0 %v2766_v15, %s2950_s21 }
  0xf6   :  { %v2768_v18 = vpop.eup %2767 }
  0xf7   :  { %v223_v19 = vadd.f32 1.0, %v2768_v18 }
  0xf9   :  { %228 = vrot.lane.b32.xlu0 %v133_v16, %s2951_s24  ;;  %2769 = vrcp.f32 %v223_v19 }
 0x103   :  { %v2770_v20 = vpop.eup %2769 }
 0x167   :  { %v234_v21 = vpop.permute.xlu0 %233 }
 0x168   :  { %v236_v22 = vmul.f32 %v2770_v20, %v234_v21 }
 0x16a   :  { %238 = vrot.lane.b32.xlu1 %v236_v22, %s2951_s24 }
 0x16b   :  { %v229_v23 = vpop.permute.xlu0 %228 }
 0x16c   :  { %v231_v24 = vmul.f32 %v2770_v20, %v229_v23 }
 0x1dc   :  { %v239_v25 = vpop.permute.xlu1 %238 }
 0x1dd   :  { %v241_v26 = vadd.f32 %v239_v25, %v231_v24 }
 0x1df   :  { %2771 = vtanh.f32 %v241_v26  ;;  %v346_v53 = vrot.slane %v241_v26, 7 }
 0x1e9   :  { %v2772_v33 = vpop.eup %2771 }
 0x1ea   :  { %244 = vrot.lane.b32.xlu1 %v2772_v33, %s2950_s21 }
 0x25c   :  { %v245_v34 = vpop.permute.xlu1 %244 }
 0x25d   :  { %v247_v35 = vmul.f32 %v2770_v20, %v245_v34 }
 0x25f   :  { %249 = vrot.lane.b32.xlu0 %v247_v35, %s2951_s24 }
 0x2d1   :  { %v250_v36 = vpop.permute.xlu0 %249 }
 0x2d2   :  { %253 = vst.msk [vmem:[#allocation2] sm:$0x1] %vm252_vm3, %v250_v36  ;;  %2476 = vmatmul.mubr.msk.f32.vlgmr.msra.gmra.mrb[2].mxu1 %vm254_vm4, %v250_v36 }
 0x2d3   :  { %2675 = vmatpush3.bf16.msra.mxu1 %v3094_v30  ;;  %2497 = vmatprep.mubr.msk.f32.mxu1 %vm2949_vm1, %v2948_v5 }
 0x2d4   :  { %2676 = vmatprep.subr.bf16.mxu1 %v2947_v3 }
 0x2d7   :  { %2678 = vmatpush3.bf16.msra.mxu1 %v3100_v32 }
 0x2d8   :  { %2685 = vmatprep.subr.bf16.mxu1 %v2947_v3 }
 0x3a5   :  { %v323_v40 = vpop.f32.mrb[2].mxu1 }
 0x3a6   :  { %v328_v42 = vrot.slane %v323_v40, 7  ;;  %v2477_v43 = vpop.f32.mrb[3].mxu1 }
 0x3a8   :  { %v330_v44 = vadd.f32 %v328_v42, %v3073_v10 }
 0x3aa   :  { %v337_v45 = vadd.f32 %v3125_v41, %v330_v44 }
 0x3ac   :  { %2773 = vtanh.f32 %v337_v45  ;;  %v2330_v47 = vmul.f32 -1.442695, %v337_v45 }
 0x3ae   :  { %2775 = vpow2.f32 %v2330_v47 }
 0x3b6   :  { %v2774_v46 = vpop.eup %2773 }
 0x3b7   :  { %350 = vrot.lane.b32.xlu1 %v2774_v46, %s2950_s21 }
 0x3b8   :  { %v2776_v48 = vpop.eup %2775 }
 0x3b9   :  { %v341_v49 = vadd.f32 1.0, %v2776_v48 }
 0x3bb   :  { %2777 = vrcp.f32 %v341_v49 }
 0x3c5   :  { %v2778_v50 = vpop.eup %2777 }
 0x3c6   :  { %v348_v54 = vmul.f32 %v2778_v50, %v346_v53 }
 0x429   :  { %v351_v51 = vpop.permute.xlu1 %350 }
 0x42a   :  { %v353_v52 = vmul.f32 %v2778_v50, %v351_v51 }
 0x42c   :  { %355 = vrot.lane.b32.xlu0 %v353_v52, %s2951_s24 }
 0x49e   :  { %v356_v55 = vpop.permute.xlu0 %355 }
 0x49f   :  { %v358_v56 = vadd.f32 %v356_v55, %v348_v54 }
 0x4a1   :  { %2779 = vtanh.f32 %v358_v56  ;;  %v459_v13 = vrot.slane %v358_v56, 7 }
 0x4ab   :  { %v2780_v57 = vpop.eup %2779 }
 0x4ac   :  { %361 = vrot.lane.b32.xlu1 %v2780_v57, %s2950_s21 }
 0x51e   :  { %v362_v58 = vpop.permute.xlu1 %361 }
 0x51f   :  { %v3132_v59 = vmul.f32 %v2778_v50, %v362_v58 }
 0x521   :  { %v371_v60 = vrot.slane %v3132_v59, 1 }
 0x523   :  { %372 = vrot.lane.b32.xlu0 %v371_v60, %s2951_s24 }
 0x595   :  { %v373_v61 = vpop.permute.xlu0 %372 }
 0x596   :  { %2487 = vmatmul.mubr.msk.f32.vlgmr.msra.gmra.mrb[2].mxu0 %vm254_vm4, %v373_v61 }
 0x597   :  { %2681 = vmatpush3.bf16.msra.mxu0 %v3094_v30  ;;  %2508 = vmatprep.mubr.msk.f32.mxu0 %vm2949_vm1, %v2948_v5 }
 0x598   :  { %2682 = vmatprep.subr.bf16.mxu0 %v2947_v3 }
 0x59b   :  { %2684 = vmatpush3.bf16.msra.mxu0 %v3100_v32 }
 0x59c   :  { %2691 = vmatprep.subr.bf16.mxu0 %v2947_v3 }
 0x669   :  { %v442_v62 = vpop.f32.mrb[2].mxu0 }
 0x66a   :  { %v447_v63 = vrot.slane %v442_v62, 6  ;;  %v2488_v0 = vpop.f32.mrb[3].mxu0 }
 0x66c   :  { %v449_v1 = vadd.f32 %v447_v63, %v3073_v10 }
 0x66e   :  { %v450_v2 = vadd.f32 %v449_v1, %v3125_v41 }
 0x670   :  { %2781 = vtanh.f32 %v450_v2  ;;  %v2332_v6 = vmul.f32 -1.442695, %v450_v2 }
 0x672   :  { %2783 = vpow2.f32 %v2332_v6 }
 0x67a   :  { %v2782_v4 = vpop.eup %2781 }
 0x67b   :  { %463 = vrot.lane.b32.xlu1 %v2782_v4, %s2950_s21 }
 0x67c   :  { %v2784_v7 = vpop.eup %2783 }
 0x67d   :  { %v454_v8 = vadd.f32 1.0, %v2784_v7 }
 0x67f   :  { %2785 = vrcp.f32 %v454_v8 }
 0x689   :  { %v2786_v9 = vpop.eup %2785 }
 0x68a   :  { %v461_v14 = vmul.f32 %v2786_v9, %v459_v13 }
 0x6ed   :  { %v464_v11 = vpop.permute.xlu1 %463 }
 0x6ee   :  { %v466_v12 = vmul.f32 %v2786_v9, %v464_v11 }
 0x6f0   :  { %468 = vrot.lane.b32.xlu0 %v466_v12, %s2951_s24 }
 0x762   :  { %v469_v15 = vpop.permute.xlu0 %468 }
 0x763   :  { %v471_v16 = vadd.f32 %v469_v15, %v461_v14 }
 0x765   :  { %2787 = vtanh.f32 %v471_v16  ;;  %v572_v36 = vrot.slane %v471_v16, 7 }
 0x76f   :  { %v2788_v17 = vpop.eup %2787 }
 0x770   :  { %474 = vrot.lane.b32.xlu1 %v2788_v17, %s2950_s21 }
 0x7e2   :  { %v475_v18 = vpop.permute.xlu1 %474 }
 0x7e3   :  { %v3148_v19 = vmul.f32 %v2786_v9, %v475_v18 }
 0x7e5   :  { %v484_v20 = vrot.slane %v3148_v19, 2 }
 0x7e7   :  { %485 = vrot.lane.b32.xlu0 %v484_v20, %s2951_s24 }
 0x859   :  { %v486_v21 = vpop.permute.xlu0 %485 }
 0x85a   :  { %2498 = vmatmul.mubr.msk.f32.vlgmr.msra.gmra.mrb[4].mxu1 %vm254_vm4, %v486_v21 }
 0x85b   :  { %2687 = vmatpush3.bf16.msra.mxu1 %v3094_v30  ;;  %2519 = vmatprep.mubr.msk.f32.mxu1 %vm2949_vm1, %v2948_v5 }
 0x85c   :  { %2688 = vmatprep.subr.bf16.mxu1 %v2947_v3 }
 0x85f   :  { %2690 = vmatpush3.bf16.msra.mxu1 %v3100_v32 }
 0x860   :  { %2697 = vmatprep.subr.bf16.mxu1 %v2947_v3 }
 0x92d   :  { %v555_v22 = vpop.f32.mrb[4].mxu1 }
 0x92e   :  { %v560_v23 = vrot.slane %v555_v22, 5  ;;  %v2499_v24 = vpop.f32.mrb[5].mxu1 }
 0x930   :  { %v562_v25 = vadd.f32 %v560_v23, %v3073_v10 }
 0x932   :  { %v563_v26 = vadd.f32 %v562_v25, %v3125_v41 }
 0x934   :  { %2789 = vtanh.f32 %v563_v26  ;;  %v2334_v28 = vmul.f32 -1.442695, %v563_v26 }
 0x936   :  { %2791 = vpow2.f32 %v2334_v28 }
 0x93e   :  { %v2790_v27 = vpop.eup %2789 }
 0x93f   :  { %576 = vrot.lane.b32.xlu1 %v2790_v27, %s2950_s21 }
 0x940   :  { %v2792_v29 = vpop.eup %2791 }
 0x941   :  { %v567_v31 = vadd.f32 1.0, %v2792_v29 }
 0x943   :  { %2793 = vrcp.f32 %v567_v31 }
 0x94d   :  { %v2794_v33 = vpop.eup %2793 }
 0x94e   :  { %v574_v40 = vmul.f32 %v2794_v33, %v572_v36 }
 0x9b1   :  { %v577_v34 = vpop.permute.xlu1 %576 }
 0x9b2   :  { %v579_v35 = vmul.f32 %v2794_v33, %v577_v34 }
 0x9b4   :  { %581 = vrot.lane.b32.xlu0 %v579_v35, %s2951_s24 }
 0xa26   :  { %v582_v42 = vpop.permute.xlu0 %581 }
 0xa27   :  { %v584_v43 = vadd.f32 %v582_v42, %v574_v40 }
 0xa29   :  { %2795 = vtanh.f32 %v584_v43  ;;  %v685_v62 = vrot.slane %v584_v43, 7 }
 0xa33   :  { %v2796_v44 = vpop.eup %2795 }
 0xa34   :  { %587 = vrot.lane.b32.xlu1 %v2796_v44, %s2950_s21 }
 0xaa6   :  { %v588_v45 = vpop.permute.xlu1 %587 }
 0xaa7   :  { %v3164_v46 = vmul.f32 %v2794_v33, %v588_v45 }
 0xaa9   :  { %v597_v47 = vrot.slane %v3164_v46, 3 }
 0xaab   :  { %598 = vrot.lane.b32.xlu0 %v597_v47, %s2951_s24 }
 0xb1d   :  { %v599_v48 = vpop.permute.xlu0 %598 }
 0xb1e   :  { %2509 = vmatmul.mubr.msk.f32.vlgmr.msra.gmra.mrb[4].mxu0 %vm254_vm4, %v599_v48 }
 0xb1f   :  { %2693 = vmatpush3.bf16.msra.mxu0 %v3094_v30  ;;  %2530 = vmatprep.mubr.msk.f32.mxu0 %vm2949_vm1, %v2948_v5 }
 0xb20   :  { %2694 = vmatprep.subr.bf16.mxu0 %v2947_v3 }
 0xb23   :  { %2696 = vmatpush3.bf16.msra.mxu0 %v3100_v32 }
 0xb24   :  { %2703 = vmatprep.subr.bf16.mxu0 %v2947_v3 }
 0xbf1   :  { %v668_v49 = vpop.f32.mrb[4].mxu0 }
 0xbf2   :  { %v673_v50 = vrot.slane %v668_v49, 4  ;;  %v2510_v51 = vpop.f32.mrb[5].mxu0 }
 0xbf4   :  { %v675_v52 = vadd.f32 %v673_v50, %v3073_v10 }
 0xbf6   :  { %v676_v53 = vadd.f32 %v675_v52, %v3125_v41 }
 0xbf8   :  { %2797 = vtanh.f32 %v676_v53  ;;  %v2336_v55 = vmul.f32 -1.442695, %v676_v53 }
 0xbfa   :  { %2799 = vpow2.f32 %v2336_v55 }
 0xc02   :  { %v2798_v54 = vpop.eup %2797 }
 0xc03   :  { %689 = vrot.lane.b32.xlu1 %v2798_v54, %s2950_s21 }
 0xc04   :  { %v2800_v56 = vpop.eup %2799 }
 0xc05   :  { %v680_v57 = vadd.f32 1.0, %v2800_v56 }
 0xc07   :  { %2801 = vrcp.f32 %v680_v57 }
 0xc11   :  { %v2802_v58 = vpop.eup %2801 }
 0xc12   :  { %v687_v63 = vmul.f32 %v2802_v58, %v685_v62 }
 0xc75   :  { %v690_v60 = vpop.permute.xlu1 %689 }
 0xc76   :  { %v692_v61 = vmul.f32 %v2802_v58, %v690_v60 }
 0xc78   :  { %694 = vrot.lane.b32.xlu0 %v692_v61, %s2951_s24 }
 0xcea   :  { %v695_v0 = vpop.permute.xlu0 %694 }
 0xceb   :  { %v697_v1 = vadd.f32 %v695_v0, %v687_v63 }
 0xced   :  { %2803 = vtanh.f32 %v697_v1  ;;  %v798_v21 = vrot.slane %v697_v1, 7 }
 0xcf7   :  { %v2804_v2 = vpop.eup %2803 }
 0xcf8   :  { %700 = vrot.lane.b32.xlu1 %v2804_v2, %s2950_s21 }
 0xd6a   :  { %v701_v4 = vpop.permute.xlu1 %700 }
 0xd6b   :  { %v3180_v6 = vmul.f32 %v2802_v58, %v701_v4 }
 0xd6d   :  { %v710_v7 = vrot.slane %v3180_v6, 4 }
 0xd6f   :  { %711 = vrot.lane.b32.xlu0 %v710_v7, %s2951_s24 }
 0xde1   :  { %v712_v8 = vpop.permute.xlu0 %711 }
 0xde2   :  { %2520 = vmatmul.mubr.msk.f32.vlgmr.msra.gmra.mrb[6].mxu1 %vm254_vm4, %v712_v8 }
 0xde3   :  { %2699 = vmatpush3.bf16.msra.mxu1 %v3094_v30  ;;  %2541 = vmatprep.mubr.msk.f32.mxu1 %vm2949_vm1, %v2948_v5 }
 0xde4   :  { %2700 = vmatprep.subr.bf16.mxu1 %v2947_v3 }
 0xde7   :  { %2702 = vmatpush3.bf16.msra.mxu1 %v3100_v32 }
 0xde8   :  { %2555 = vmatprep.subr.mxu1 %v2948_v5 }
 0xeb5   :  { %v781_v9 = vpop.f32.mrb[6].mxu1 }
 0xeb6   :  { %v786_v11 = vrot.slane %v781_v9, 3  ;;  %v2521_v12 = vpop.f32.mrb[7].mxu1 }
 0xeb8   :  { %v788_v13 = vadd.f32 %v786_v11, %v3073_v10 }
 0xeba   :  { %v789_v14 = vadd.f32 %v788_v13, %v3125_v41 }
 0xebc   :  { %2805 = vtanh.f32 %v789_v14  ;;  %v2338_v30 = vmul.f32 -1.442695, %v789_v14 }
 0xebe   :  { %2807 = vpow2.f32 %v2338_v30  ;;  %v141_v30 = vld [vmem:[%s3500_s7 + $0x8] sm:$0xff] }
 0xec6   :  { %v2806_v15 = vpop.eup %2805 }
 0xec7   :  { %802 = vrot.lane.b32.xlu1 %v2806_v15, %s2950_s21  ;;  %v140_v15 = vld [vmem:[%s3500_s7] sm:$0xff] }
 0xec8   :  { %v2808_v16 = vpop.eup %2807 }
 0xec9   :  { %v793_v17 = vadd.f32 1.0, %v2808_v16  ;;  %v2704_v16 = vpack.c.bf16 %v141_v30, %v140_v15 }
 0xecb   :  { %2809 = vrcp.f32 %v793_v17  ;;  %v142_v17 = vld [vmem:[%s3500_s7 + $0x10] sm:$0xff] }
 0xed5   :  { %v2810_v18 = vpop.eup %2809 }
 0xed6   :  { %v800_v22 = vmul.f32 %v2810_v18, %v798_v21 }
 0xf39   :  { %v803_v32 = vpop.permute.xlu1 %802 }
 0xf3a   :  { %v805_v20 = vmul.f32 %v2810_v18, %v803_v32 }
 0xf3c   :  { %807 = vrot.lane.b32.xlu0 %v805_v20, %s2951_s24 }
 0xfae   :  { %v808_v23 = vpop.permute.xlu0 %807 }
 0xfaf   :  { %v810_v24 = vadd.f32 %v808_v23, %v800_v22 }
 0xfb1   :  { %2811 = vtanh.f32 %v810_v24  ;;  %v911_v49 = vrot.slane %v810_v24, 7 }
 0xfbb   :  { %v2812_v25 = vpop.eup %2811 }
 0xfbc   :  { %813 = vrot.lane.b32.xlu1 %v2812_v25, %s2950_s21  ;;  %v1199_v25 = vld [vmem:[%s3502_s9] sm:$0xff] }
0x102e   :  { %v814_v26 = vpop.permute.xlu1 %813 }
0x102f   :  { %v816_v27 = vmul.f32 %v2810_v18, %v814_v26  ;;  %v1123_v18 = vld [vmem:[%s3501_s8] sm:$0xff] }
0x1031   :  { %v823_v28 = vrot.slane %v816_v27, 5 }
0x1033   :  { %824 = vrot.lane.b32.xlu0 %v823_v28, %s2951_s24  ;;  %v1198_v28 = vld [vmem:[%s3495_s2 + $0x1] sm:$0x1] }
0x10a5   :  { %v825_v29 = vpop.permute.xlu0 %824 }
0x10a6   :  { %2531 = vmatmul.mubr.msk.f32.vlgmr.msra.gmra.mrb[6].mxu0 %vm254_vm4, %v825_v29 }
0x10a7   :  { %2552 = vmatprep.mubr.msk.f32.mxu0 %vm2949_vm1, %v2948_v5  ;;  %2705 = vmatpush3.bf16.msra.mxu0 %v2704_v16 }
0x10a8   :  { %2706 = vmatprep.subr.bf16.mxu0 %v2947_v3 }
0x1179   :  { %v894_v31 = vpop.f32.mrb[6].mxu0 }
0x117a   :  { %v899_v33 = vrot.slane %v894_v31, 2  ;;  %v2532_v34 = vpop.f32.mrb[7].mxu0 }
0x117c   :  { %v901_v35 = vadd.f32 %v899_v33, %v3073_v10 }
0x117e   :  { %v902_v36 = vadd.f32 %v901_v35, %v3125_v41  ;;  %v1204_v35 = vld [vmem:[%s3504_s11] sm:$0x1] }
0x1180   :  { %2813 = vtanh.f32 %v902_v36  ;;  %v2340_v42 = vmul.f32 -1.442695, %v902_v36 }
0x1182   :  { %2815 = vpow2.f32 %v2340_v42 }
0x118a   :  { %v2814_v40 = vpop.eup %2813 }
0x118b   :  { %915 = vrot.lane.b32.xlu1 %v2814_v40, %s2950_s21 }
0x118c   :  { %v2816_v43 = vpop.eup %2815 }
0x118d   :  { %v906_v44 = vadd.f32 1.0, %v2816_v43 }
0x118f   :  { %2817 = vrcp.f32 %v906_v44 }
0x1199   :  { %v2818_v45 = vpop.eup %2817 }
0x119a   :  { %v913_v50 = vmul.f32 %v2818_v45, %v911_v49 }
0x11fd   :  { %v916_v47 = vpop.permute.xlu1 %915 }
0x11fe   :  { %v918_v48 = vmul.f32 %v2818_v45, %v916_v47 }
0x1200   :  { %920 = vrot.lane.b32.xlu0 %v918_v48, %s2951_s24 }
0x1272   :  { %v921_v51 = vpop.permute.xlu0 %920 }
0x1273   :  { %v923_v52 = vadd.f32 %v921_v51, %v913_v50 }
0x1275   :  { %2819 = vtanh.f32 %v923_v52 }
0x127f   :  { %v2820_v53 = vpop.eup %2819 }
0x1280   :  { %926 = vrot.lane.b32.xlu1 %v2820_v53, %s2950_s21 }
0x12f2   :  { %v927_v54 = vpop.permute.xlu1 %926 }
0x12f3   :  { %v929_v55 = vmul.f32 %v2818_v45, %v927_v54 }
0x12f5   :  { %v936_v56 = vrot.slane %v929_v55, 6 }
0x12f7   :  { %937 = vrot.lane.b32.xlu0 %v936_v56, %s2951_s24  ;;  %v1200_v56 = vld [vmem:[%s3503_s10] sm:$0xff] }
0x1369   :  { %v938_v57 = vpop.permute.xlu0 %937 }
0x136a   :  { %2542 = vmatmul.mubr.msk.f32.vlgmr.msra.gmra.mrb[8].mxu1 %vm254_vm4, %v938_v57  ;;  %v1201_v57 = vld [vmem:[%s3503_s10 + $0x8] sm:$0xff] }
0x136b   :  { %2557 = vmatprep.mubr.msk.f32.mxu1 %vm2949_vm1, %v2948_v5  ;;  %2556 = vmatpush3.msra.mxu1 %v1123_v18 }
0x136c   :  { %2709 = vmatprep.subr.bf16.mxu1 %v2947_v3 }
0x143d   :  { %v1007_v58 = vpop.f32.mrb[8].mxu1 }
0x143e   :  { %v1012_v60 = vrot.slane %v1007_v58, 1  ;;  %v2543_v61 = vpop.f32.mrb[9].mxu1  ;;  %v1202_v58 = vld [vmem:[%s3503_s10 + $0x10] sm:$0xff] }
0x143f   :  { %v1203_v61 = vld [vmem:[%s3503_s10 + $0x18] sm:$0xff] }
0x1440   :  { %v1014_v62 = vadd.f32 %v1012_v60, %v3073_v10  ;;  %v1024_v10 = vrot.slane %v923_v52, 7  ;;  %v3291_v60 = vpack.c.bf16 %v1201_v57, %v1200_v56 }
0x1442   :  { %v1015_v63 = vadd.f32 %v1014_v62, %v3125_v41  ;;  %v3297_v62 = vpack.c.bf16 %v1203_v61, %v1202_v58 }
0x1444   :  { %2821 = vtanh.f32 %v1015_v63  ;;  %v2342_v1 = vmul.f32 -1.442695, %v1015_v63 }
0x1446   :  { %2823 = vpow2.f32 %v2342_v1 }
0x144e   :  { %v2822_v0 = vpop.eup %2821 }
0x144f   :  { %1028 = vrot.lane.b32.xlu1 %v2822_v0, %s2950_s21 }
0x1450   :  { %v2824_v2 = vpop.eup %2823 }
0x1451   :  { %v1019_v4 = vadd.f32 1.0, %v2824_v2 }
0x1453   :  { %2825 = vrcp.f32 %v1019_v4 }
0x145d   :  { %v2826_v7 = vpop.eup %2825 }
0x145e   :  { %v1026_v41 = vmul.f32 %v2826_v7, %v1024_v10 }
0x14c1   :  { %v1029_v8 = vpop.permute.xlu1 %1028 }
0x14c2   :  { %v1031_v9 = vmul.f32 %v2826_v7, %v1029_v8 }
0x14c4   :  { %1033 = vrot.lane.b32.xlu0 %v1031_v9, %s2951_s24 }
0x14c8   :  { %366 = vrot.lane.b32.xlu0 %v3132_v59, %s2951_s24 }
0x14cc   :  { %592 = vrot.lane.b32.xlu0 %v3164_v46, %s2951_s24 }
0x14d0   :  { %818 = vrot.lane.b32.xlu0 %v816_v27, %s2951_s24  ;;  %v1197_v27 = vld [vmem:[%s3514_s18 + $0x1] sm:$0x1] }
0x1536   :  { %v1034_v11 = vpop.permute.xlu0 %1033 }
0x1537   :  { %v3218_v12 = vadd.f32 %v1034_v11, %v1026_v41 }
0x1539   :  { %2827 = vtanh.f32 %v3218_v12 }
0x153a   :  { %v367_v13 = vpop.permute.xlu0 %366 }
0x153b   :  { %370 = vst.msk [vmem:[#allocation2] sm:$0x2] %vm369_vm5, %v367_v13 }
0x153e   :  { %v593_v14 = vpop.permute.xlu0 %592 }
0x153f   :  { %596 = vst.msk [vmem:[#allocation2] sm:$0x8] %vm595_vm6, %v593_v14 }
0x1542   :  { %v819_v59 = vpop.permute.xlu0 %818 }
0x1543   :  { %v2828_v46 = vpop.eup %2827  ;;  %822 = vst.msk [vmem:[#allocation2] sm:$0x20] %vm821_vm7, %v819_v59 }
0x1544   :  { %1039 = vrot.lane.b32.xlu1 %v2828_v46, %s2950_s21 }
0x1548   :  { %479 = vrot.lane.b32.xlu1 %v3148_v19, %s2951_s24  ;;  %v143_v19 = vld [vmem:[%s3500_s7 + $0x18] sm:$0xff] }
0x154c   :  { %705 = vrot.lane.b32.xlu1 %v3180_v6, %s2951_s24  ;;  %v2707_v6 = vpack.c.bf16 %v143_v19, %v142_v17 }
0x154e   :  { %2708 = vmatpush3.bf16.msra.mxu0 %v2707_v6 }
0x154f   :  { %2560 = vmatprep.subr.mxu0 %v2948_v5 }
0x1550   :  { %931 = vrot.lane.b32.xlu1 %v929_v55, %s2951_s24 }
0x15b6   :  { %v1040_v32 = vpop.permute.xlu1 %1039 }
0x15b7   :  { %v1042_v20 = vmul.f32 %v2826_v7, %v1040_v32  ;;  %v3318_v7 = vrot.slane %v1204_v35, %v334_v39 }
0x15b9   :  { %1044 = vrot.lane.b32.xlu0 %v1042_v20, %s2951_s24 }
0x15ba   :  { %v480_v21 = vpop.permute.xlu1 %479 }
0x15bb   :  { %483 = vst.msk [vmem:[#allocation2] sm:$0x4] %vm482_vm8, %v480_v21 }
0x15bd   :  { %1292 = vrot.lane.b32.xlu0 %v1198_v28, %s2951_s24 }
0x15be   :  { %v706_v22 = vpop.permute.xlu1 %705 }
0x15bf   :  { %709 = vst.msk [vmem:[#allocation2] sm:$0x10] %vm708_vm9, %v706_v22 }
0x15c2   :  { %v932_v23 = vpop.permute.xlu1 %931 }
0x15c3   :  { %935 = vst.msk [vmem:[#allocation2] sm:$0x40] %vm934_vm10, %v932_v23 }
0x162b   :  { %v1045_v24 = vpop.permute.xlu0 %1044 }
0x162c   :  { %1048 = vst.msk [vmem:[#allocation2] sm:$0x80] %vm1047_vm11, %v1045_v24 }
0x162f   :  { %v1293_v52 = vpop.permute.xlu0 %1292 }
0x1633   :  { %v1049_v26 = vld [vmem:[#allocation2] sm:$0xff] }
0x1634   :  { %2553 = vmatmul.mubr.msk.f32.vlgmr.msra.gmra.mrb[8].mxu0 %vm254_vm4, %v1049_v26 }
0x1635   :  { %2561 = vmatpush3.msra.mxu0 %v1199_v25  ;;  %2562 = vmatprep.mubr.msk.f32.mxu0 %vm2949_vm1, %v2948_v5 }
0x1636   :  { %2715 = vmatprep.subr.bf16.mxu0 %v2947_v3 }
0x1638   :  { %2563 = vmatmul.mubr.msk.f32.vlgmr.msra.gmra.mrb[10].mxu0 %vm144_vm0, %v1197_v27 }
0x1639   :  { %2584 = vmatprep.mubr.msk.f32.mxu0 %vm2949_vm1, %v2948_v5  ;;  %2717 = vmatpush3.bf16.msra.mxu0 %v3291_v60 }
0x163a   :  { %2718 = vmatprep.subr.bf16.mxu0 %v2947_v3 }
0x163d   :  { %2720 = vmatpush3.bf16.msra.mxu0 %v3297_v62 }
0x163e   :  { %2727 = vmatprep.subr.bf16.mxu0 %v2947_v3 }
0x1707   :  { %v1119_v29 = vpop.f32.mrb[8].mxu0 }
0x1708   :  { %v2554_v31 = vpop.f32.mrb[9].mxu0  ;;  %2558 = vmatmul.mubr.msk.f32.vlgmr.msra.gmra.mrb[10].mxu1 %vm144_vm0, %v1119_v29  ;;  %2282 = vst.msk [vmem:[#allocation3 - $0x7] sm:$0x80] %vm2281_vm12, %v1119_v29 }
0x1709   :  { %2573 = vmatprep.mubr.msk.f32.mxu1 %vm2949_vm1, %v2948_v5  ;;  %2711 = vmatpush3.bf16.msra.mxu1 %v3291_v60 }
0x170a   :  { %2712 = vmatprep.subr.bf16.mxu1 %v2947_v3 }
0x170b   :  { %v1278_v33 = vpop.f32.mrb[10].mxu0 }
0x170c   :  { %v2564_v34 = vpop.f32.mrb[11].mxu0 }
0x170d   :  { %2714 = vmatpush3.bf16.msra.mxu1 %v3297_v62 }
0x170e   :  { %2721 = vmatprep.subr.bf16.mxu1 %v2947_v3 }
0x17db   :  { %v3277_v36 = vpop.f32.mrb[10].mxu1 }
0x17dc   :  { %v1282_v40 = vadd.f32 %v1278_v33, %v3277_v36  ;;  %v2559_v42 = vpop.f32.mrb[11].mxu1 }
0x17de   :  { %v1283_v43 = vadd.f32 %v1282_v40, %v1204_v35 }
0x17e0   :  { %2829 = vtanh.f32 %v1283_v43  ;;  %v2346_v45 = vmul.f32 -1.442695, %v1283_v43 }
0x17e2   :  { %2831 = vpow2.f32 %v2346_v45 }
0x17ea   :  { %v2830_v44 = vpop.eup %2829 }
0x17eb   :  { %1297 = vrot.lane.b32.xlu1 %v2830_v44, %s2950_s21 }
0x17ec   :  { %v2832_v47 = vpop.eup %2831 }
0x17ed   :  { %v1287_v48 = vadd.f32 1.0, %v2832_v47 }
0x17ef   :  { %2833 = vrcp.f32 %v1287_v48 }
0x17f9   :  { %v2834_v49 = vpop.eup %2833 }
0x17fa   :  { %v1295_v53 = vmul.f32 %v2834_v49, %v1293_v52 }
0x185d   :  { %v1298_v50 = vpop.permute.xlu1 %1297 }
0x185e   :  { %v1300_v51 = vmul.f32 %v2834_v49, %v1298_v50 }
0x1860   :  { %1302 = vrot.lane.b32.xlu1 %v1300_v51, %s2951_s24 }
0x18d2   :  { %v1303_v54 = vpop.permute.xlu1 %1302 }
0x18d3   :  { %v1305_v55 = vadd.f32 %v1303_v54, %v1295_v53 }
0x18d5   :  { %2835 = vtanh.f32 %v1305_v55  ;;  %v1408_v39 = vrot.slane %v1305_v55, 7 }
0x18df   :  { %v2836_v63 = vpop.eup %2835 }
0x18e0   :  { %1308 = vrot.lane.b32.xlu0 %v2836_v63, %s2950_s21 }
0x1952   :  { %v1309_v0 = vpop.permute.xlu0 %1308 }
0x1953   :  { %v1311_v1 = vmul.f32 %v2834_v49, %v1309_v0 }
0x1955   :  { %1313 = vrot.lane.b32.xlu1 %v1311_v1, %s2951_s24 }
0x19c7   :  { %v1314_v2 = vpop.permute.xlu1 %1313 }
0x19c8   :  { %1316 = vst.msk [vmem:[#allocation2] sm:$0x1] %vm252_vm3, %v1314_v2  ;;  %2574 = vmatmul.mubr.msk.f32.vlgmr.msra.gmra.mrb[12].mxu1 %vm254_vm4, %v1314_v2 }
0x19c9   :  { %2723 = vmatpush3.bf16.msra.mxu1 %v3291_v60  ;;  %2595 = vmatprep.mubr.msk.f32.mxu1 %vm2949_vm1, %v2948_v5 }
0x19ca   :  { %2724 = vmatprep.subr.bf16.mxu1 %v2947_v3 }
0x19cd   :  { %2726 = vmatpush3.bf16.msra.mxu1 %v3297_v62 }
0x19ce   :  { %2733 = vmatprep.subr.bf16.mxu1 %v2947_v3 }
0x1a9b   :  { %v1385_v4 = vpop.f32.mrb[12].mxu1 }
0x1a9c   :  { %v1390_v8 = vrot.slane %v1385_v4, 7  ;;  %v2575_v9 = vpop.f32.mrb[13].mxu1 }
0x1a9e   :  { %v1392_v10 = vadd.f32 %v1390_v8, %v3277_v36 }
0x1aa0   :  { %v1399_v41 = vadd.f32 %v3318_v7, %v1392_v10 }
0x1aa2   :  { %2837 = vtanh.f32 %v1399_v41  ;;  %v2348_v13 = vmul.f32 -1.442695, %v1399_v41 }
0x1aa4   :  { %2839 = vpow2.f32 %v2348_v13 }
0x1aac   :  { %v2838_v11 = vpop.eup %2837 }
0x1aad   :  { %1412 = vrot.lane.b32.xlu0 %v2838_v11, %s2950_s21 }
0x1aae   :  { %v2840_v14 = vpop.eup %2839 }
0x1aaf   :  { %v1403_v59 = vadd.f32 1.0, %v2840_v14 }
0x1ab1   :  { %2841 = vrcp.f32 %v1403_v59 }
0x1abb   :  { %v2842_v46 = vpop.eup %2841 }
0x1abc   :  { %v1410_v30 = vmul.f32 %v2842_v46, %v1408_v39 }
0x1b1f   :  { %v1413_v15 = vpop.permute.xlu0 %1412 }
0x1b20   :  { %v1415_v38 = vmul.f32 %v2842_v46, %v1413_v15 }
0x1b22   :  { %1417 = vrot.lane.b32.xlu1 %v1415_v38, %s2951_s24 }
0x1b94   :  { %v1418_v16 = vpop.permute.xlu1 %1417 }
0x1b95   :  { %v1420_v17 = vadd.f32 %v1418_v16, %v1410_v30 }
0x1b97   :  { %2843 = vtanh.f32 %v1420_v17  ;;  %v1520_v35 = vrot.slane %v1420_v17, 7 }
0x1ba1   :  { %v2844_v19 = vpop.eup %2843 }
0x1ba2   :  { %1423 = vrot.lane.b32.xlu0 %v2844_v19, %s2950_s21 }
0x1c14   :  { %v1424_v6 = vpop.permute.xlu0 %1423 }
0x1c15   :  { %v3325_v18 = vmul.f32 %v2842_v46, %v1424_v6 }
0x1c17   :  { %v1432_v32 = vrot.slane %v3325_v18, 1 }
0x1c19   :  { %1433 = vrot.lane.b32.xlu1 %v1432_v32, %s2951_s24 }
0x1c8b   :  { %v1434_v20 = vpop.permute.xlu1 %1433 }
0x1c8c   :  { %2585 = vmatmul.mubr.msk.f32.vlgmr.msra.gmra.mrb[12].mxu0 %vm254_vm4, %v1434_v20 }
0x1c8d   :  { %2729 = vmatpush3.bf16.msra.mxu0 %v3291_v60  ;;  %2606 = vmatprep.mubr.msk.f32.mxu0 %vm2949_vm1, %v2948_v5 }
0x1c8e   :  { %2730 = vmatprep.subr.bf16.mxu0 %v2947_v3 }
0x1c91   :  { %2732 = vmatpush3.bf16.msra.mxu0 %v3297_v62 }
0x1c92   :  { %2739 = vmatprep.subr.bf16.mxu0 %v2947_v3 }
0x1d5f   :  { %v1503_v21 = vpop.f32.mrb[12].mxu0 }
0x1d60   :  { %v1508_v22 = vrot.slane %v1503_v21, 6  ;;  %v2586_v23 = vpop.f32.mrb[13].mxu0 }
0x1d62   :  { %v1510_v24 = vadd.f32 %v1508_v22, %v3277_v36 }
0x1d64   :  { %v1511_v25 = vadd.f32 %v1510_v24, %v3318_v7 }
0x1d66   :  { %2845 = vtanh.f32 %v1511_v25  ;;  %v2350_v27 = vmul.f32 -1.442695, %v1511_v25 }
0x1d68   :  { %2847 = vpow2.f32 %v2350_v27 }
0x1d70   :  { %v2846_v26 = vpop.eup %2845 }
0x1d71   :  { %1524 = vrot.lane.b32.xlu0 %v2846_v26, %s2950_s21 }
0x1d72   :  { %v2848_v28 = vpop.eup %2847 }
0x1d73   :  { %v1515_v29 = vadd.f32 1.0, %v2848_v28 }
0x1d75   :  { %2849 = vrcp.f32 %v1515_v29 }
0x1d7f   :  { %v2850_v31 = vpop.eup %2849 }
0x1d80   :  { %v1522_v40 = vmul.f32 %v2850_v31, %v1520_v35 }
0x1de3   :  { %v1525_v33 = vpop.permute.xlu0 %1524 }
0x1de4   :  { %v1527_v34 = vmul.f32 %v2850_v31, %v1525_v33 }
0x1de6   :  { %1529 = vrot.lane.b32.xlu1 %v1527_v34, %s2951_s24 }
0x1e58   :  { %v1530_v42 = vpop.permute.xlu1 %1529 }
0x1e59   :  { %v1532_v43 = vadd.f32 %v1530_v42, %v1522_v40 }
0x1e5b   :  { %2851 = vtanh.f32 %v1532_v43  ;;  %v1632_v1 = vrot.slane %v1532_v43, 7 }
0x1e65   :  { %v2852_v44 = vpop.eup %2851 }
0x1e66   :  { %1535 = vrot.lane.b32.xlu0 %v2852_v44, %s2950_s21 }
0x1ed8   :  { %v1536_v45 = vpop.permute.xlu0 %1535 }
0x1ed9   :  { %v3341_v47 = vmul.f32 %v2850_v31, %v1536_v45 }
0x1edb   :  { %v1544_v48 = vrot.slane %v3341_v47, 2 }
0x1edd   :  { %1545 = vrot.lane.b32.xlu1 %v1544_v48, %s2951_s24 }
0x1f4f   :  { %v1546_v49 = vpop.permute.xlu1 %1545 }
0x1f50   :  { %2596 = vmatmul.mubr.msk.f32.vlgmr.msra.gmra.mrb[14].mxu1 %vm254_vm4, %v1546_v49 }
0x1f51   :  { %2735 = vmatpush3.bf16.msra.mxu1 %v3291_v60  ;;  %2617 = vmatprep.mubr.msk.f32.mxu1 %vm2949_vm1, %v2948_v5 }
0x1f52   :  { %2736 = vmatprep.subr.bf16.mxu1 %v2947_v3 }
0x1f55   :  { %2738 = vmatpush3.bf16.msra.mxu1 %v3297_v62 }
0x1f56   :  { %2745 = vmatprep.subr.bf16.mxu1 %v2947_v3 }
0x2023   :  { %v1615_v50 = vpop.f32.mrb[14].mxu1 }
0x2024   :  { %v1620_v51 = vrot.slane %v1615_v50, 5  ;;  %v2597_v52 = vpop.f32.mrb[15].mxu1 }
0x2026   :  { %v1622_v53 = vadd.f32 %v1620_v51, %v3277_v36 }
0x2028   :  { %v1623_v54 = vadd.f32 %v1622_v53, %v3318_v7 }
0x202a   :  { %2853 = vtanh.f32 %v1623_v54  ;;  %v2352_v56 = vmul.f32 -1.442695, %v1623_v54 }
0x202c   :  { %2855 = vpow2.f32 %v2352_v56 }
0x2034   :  { %v2854_v55 = vpop.eup %2853 }
0x2035   :  { %1636 = vrot.lane.b32.xlu0 %v2854_v55, %s2950_s21 }
0x2036   :  { %v2856_v57 = vpop.eup %2855 }
0x2037   :  { %v1627_v58 = vadd.f32 1.0, %v2856_v57 }
0x2039   :  { %2857 = vrcp.f32 %v1627_v58 }
0x2043   :  { %v2858_v61 = vpop.eup %2857 }
0x2044   :  { %v1634_v2 = vmul.f32 %v2858_v61, %v1632_v1 }
0x20a7   :  { %v1637_v63 = vpop.permute.xlu0 %1636 }
0x20a8   :  { %v1639_v0 = vmul.f32 %v2858_v61, %v1637_v63 }
0x20aa   :  { %1641 = vrot.lane.b32.xlu1 %v1639_v0, %s2951_s24 }
0x211c   :  { %v1642_v4 = vpop.permute.xlu1 %1641 }
0x211d   :  { %v1644_v8 = vadd.f32 %v1642_v4, %v1634_v2 }
0x211f   :  { %2859 = vtanh.f32 %v1644_v8  ;;  %v1744_v20 = vrot.slane %v1644_v8, 7 }
0x2129   :  { %v2860_v9 = vpop.eup %2859 }
0x212a   :  { %1647 = vrot.lane.b32.xlu0 %v2860_v9, %s2950_s21 }
0x219c   :  { %v1648_v10 = vpop.permute.xlu0 %1647 }
0x219d   :  { %v3357_v41 = vmul.f32 %v2858_v61, %v1648_v10 }
0x219f   :  { %v1656_v11 = vrot.slane %v3357_v41, 3 }
0x21a1   :  { %1657 = vrot.lane.b32.xlu1 %v1656_v11, %s2951_s24 }
0x2213   :  { %v1658_v13 = vpop.permute.xlu1 %1657 }
0x2214   :  { %2607 = vmatmul.mubr.msk.f32.vlgmr.msra.gmra.mrb[14].mxu0 %vm254_vm4, %v1658_v13 }
0x2215   :  { %2741 = vmatpush3.bf16.msra.mxu0 %v3291_v60  ;;  %2628 = vmatprep.mubr.msk.f32.mxu0 %vm2949_vm1, %v2948_v5 }
0x2216   :  { %2742 = vmatprep.subr.bf16.mxu0 %v2947_v3 }
0x2219   :  { %2744 = vmatpush3.bf16.msra.mxu0 %v3297_v62 }
0x221a   :  { %2751 = vmatprep.subr.bf16.mxu0 %v2947_v3 }
0x22e7   :  { %v1727_v14 = vpop.f32.mrb[14].mxu0 }
0x22e8   :  { %v1732_v59 = vrot.slane %v1727_v14, 4  ;;  %v2608_v46 = vpop.f32.mrb[15].mxu0 }
0x22ea   :  { %v1734_v15 = vadd.f32 %v1732_v59, %v3277_v36 }
0x22ec   :  { %v1735_v38 = vadd.f32 %v1734_v15, %v3318_v7 }
0x22ee   :  { %2861 = vtanh.f32 %v1735_v38  ;;  %v2354_v30 = vmul.f32 -1.442695, %v1735_v38 }
0x22f0   :  { %2863 = vpow2.f32 %v2354_v30 }
0x22f8   :  { %v2862_v39 = vpop.eup %2861 }
0x22f9   :  { %1748 = vrot.lane.b32.xlu0 %v2862_v39, %s2950_s21 }
0x22fa   :  { %v2864_v16 = vpop.eup %2863 }
0x22fb   :  { %v1739_v17 = vadd.f32 1.0, %v2864_v16 }
0x22fd   :  { %2865 = vrcp.f32 %v1739_v17 }
0x2307   :  { %v2866_v19 = vpop.eup %2865 }
0x2308   :  { %v1746_v21 = vmul.f32 %v2866_v19, %v1744_v20 }
0x236b   :  { %v1749_v6 = vpop.permute.xlu0 %1748 }
0x236c   :  { %v1751_v32 = vmul.f32 %v2866_v19, %v1749_v6 }
0x236e   :  { %1753 = vrot.lane.b32.xlu1 %v1751_v32, %s2951_s24 }
0x23e0   :  { %v1754_v22 = vpop.permute.xlu1 %1753 }
0x23e1   :  { %v1756_v23 = vadd.f32 %v1754_v22, %v1746_v21 }
0x23e3   :  { %2867 = vtanh.f32 %v1756_v23  ;;  %v1856_v48 = vrot.slane %v1756_v23, 7 }
0x23ed   :  { %v2868_v24 = vpop.eup %2867 }
0x23ee   :  { %1759 = vrot.lane.b32.xlu0 %v2868_v24, %s2950_s21 }
0x2460   :  { %v1760_v25 = vpop.permute.xlu0 %1759 }
0x2461   :  { %v3373_v26 = vmul.f32 %v2866_v19, %v1760_v25 }
0x2463   :  { %v1768_v27 = vrot.slane %v3373_v26, 4 }
0x2465   :  { %1769 = vrot.lane.b32.xlu1 %v1768_v27, %s2951_s24 }
0x24d7   :  { %v1770_v28 = vpop.permute.xlu1 %1769 }
0x24d8   :  { %2618 = vmatmul.mubr.msk.f32.vlgmr.msra.gmra.mrb[16].mxu1 %vm254_vm4, %v1770_v28 }
0x24d9   :  { %2747 = vmatpush3.bf16.msra.mxu1 %v3291_v60  ;;  %2639 = vmatprep.mubr.msk.f32.mxu1 %vm2949_vm1, %v2948_v5 }
0x24da   :  { %2748 = vmatprep.subr.bf16.mxu1 %v2947_v3 }
0x24dd   :  { %2750 = vmatpush3.bf16.msra.mxu1 %v3297_v62 }
0x24de   :  { %2653 = vmatprep.subr.mxu1 %v2948_v5 }
0x25ab   :  { %v1839_v29 = vpop.f32.mrb[16].mxu1 }
0x25ac   :  { %v1844_v31 = vrot.slane %v1839_v29, 3  ;;  %v2619_v33 = vpop.f32.mrb[17].mxu1 }
0x25ae   :  { %v1846_v34 = vadd.f32 %v1844_v31, %v3277_v36 }
0x25b0   :  { %v1847_v35 = vadd.f32 %v1846_v34, %v3318_v7 }
0x25b2   :  { %2869 = vtanh.f32 %v1847_v35  ;;  %v2356_v60 = vmul.f32 -1.442695, %v1847_v35  ;;  %v1206_v35 = vld [vmem:[%s3505_s12 + $0x8] sm:$0xff] }
0x25b4   :  { %2871 = vpow2.f32 %v2356_v60  ;;  %v1207_v60 = vld [vmem:[%s3505_s12 + $0x10] sm:$0xff] }
0x25bc   :  { %v2870_v40 = vpop.eup %2869 }
0x25bd   :  { %1860 = vrot.lane.b32.xlu0 %v2870_v40, %s2950_s21 }
0x25be   :  { %v2872_v42 = vpop.eup %2871 }
0x25bf   :  { %v1851_v43 = vadd.f32 1.0, %v2872_v42  ;;  %v2178_v42 = vld [vmem:[%s3506_s13] sm:$0xff] }
0x25c1   :  { %2873 = vrcp.f32 %v1851_v43 }
0x25cb   :  { %v2874_v44 = vpop.eup %2873 }
0x25cc   :  { %v1858_v49 = vmul.f32 %v2874_v44, %v1856_v48 }
0x262f   :  { %v1861_v62 = vpop.permute.xlu0 %1860 }
0x2630   :  { %v1863_v45 = vmul.f32 %v2874_v44, %v1861_v62 }
0x2632   :  { %1865 = vrot.lane.b32.xlu1 %v1863_v45, %s2951_s24 }
0x26a4   :  { %v1866_v50 = vpop.permute.xlu1 %1865 }
0x26a5   :  { %v1868_v51 = vadd.f32 %v1866_v50, %v1858_v49 }
0x26a7   :  { %2875 = vtanh.f32 %v1868_v51  ;;  %v1968_v13 = vrot.slane %v1868_v51, 7 }
0x26b1   :  { %v2876_v52 = vpop.eup %2875 }
0x26b2   :  { %1871 = vrot.lane.b32.xlu0 %v2876_v52, %s2950_s21  ;;  %v3448_v52 = vand.u32 127, %v332_v37 }
0x26b4   :  { %vm2261_vm13 = vcmp.lt.s32.totalorder %v3448_v52, 5  ;;  %vm2274_vm14 = vcmp.lt.s32.totalorder %v3448_v52, 85  ;;  %vm2273_vm15 = vcmp.lt.s32.totalorder %v3448_v52, 45 }
0x2724   :  { %v1872_v53 = vpop.permute.xlu0 %1871 }
0x2725   :  { %v1874_v54 = vmul.f32 %v2874_v44, %v1872_v53  ;;  %v2362_v53 = vld [vmem:[%s3507_s14] ss:$0 sm:$0xff]  ;;  %s2953_s14 = smov [#allocation3]  }
0x2726   :  { %s2302_s26 = sshll.u32 %s2953_s14, 4  ;;  %s2303_s26 = int_to_ptr.vmem [resolvable:$true] %s2302_s26 }
0x2727   :  { %v1880_v55 = vrot.slane %v1874_v54, 5  ;;  %s2899_s27 = scalar_lea.vmem %s2303_s26, 32  ;;  %p2904_p1 = scmp.lt.s32.totalorder %s2303_s26, %s2303_s26 }
0x2728   :  { %p2900_p0 = scmp.ne.s32.totalorder %s2303_s26, %s2899_s27  ;;  %p2905_p2 = scmp.lt.s32.totalorder %s2899_s27, %s2899_s27 }
0x2729   :  { %1881 = vrot.lane.b32.xlu1 %v1880_v55, %s2951_s24 }
0x272a   :  { %p2906_p3 = por %p2905_p2, %p2904_p1 }
0x272c   :  { %p2907_p4 = pnand %p2906_p3, %p2900_p0 }
0x279b   :  { %v1882_v56 = vpop.permute.xlu1 %1881 }
0x279c   :  { %2629 = vmatmul.mubr.msk.f32.vlgmr.msra.gmra.mrb[16].mxu0 %vm254_vm4, %v1882_v56 }
0x279d   :  { %2650 = vmatprep.mubr.msk.f32.mxu0 %vm2949_vm1, %v2948_v5 }
0x286f   :  { %v1951_v57 = vpop.f32.mrb[16].mxu0 }
0x2870   :  { %v1956_v58 = vrot.slane %v1951_v57, 2  ;;  %v2630_v61 = vpop.f32.mrb[17].mxu0 }
0x2872   :  { %v1958_v63 = vadd.f32 %v1956_v58, %v3277_v36 }
0x2874   :  { %v1959_v0 = vadd.f32 %v1958_v63, %v3318_v7 }
0x2876   :  { %2877 = vtanh.f32 %v1959_v0  ;;  %v2358_v2 = vmul.f32 -1.442695, %v1959_v0 }
0x2878   :  { %2879 = vpow2.f32 %v2358_v2 }
0x2880   :  { %v2878_v1 = vpop.eup %2877 }
0x2881   :  { %1972 = vrot.lane.b32.xlu0 %v2878_v1, %s2950_s21 }
0x2882   :  { %v2880_v4 = vpop.eup %2879 }
0x2883   :  { %v1963_v8 = vadd.f32 1.0, %v2880_v4 }
0x2885   :  { %2881 = vrcp.f32 %v1963_v8 }
0x288f   :  { %v2882_v9 = vpop.eup %2881 }
0x2890   :  { %v1970_v14 = vmul.f32 %v2882_v9, %v1968_v13 }
0x28f3   :  { %v1973_v10 = vpop.permute.xlu0 %1972 }
0x28f4   :  { %v1975_v11 = vmul.f32 %v2882_v9, %v1973_v10 }
0x28f6   :  { %1977 = vrot.lane.b32.xlu1 %v1975_v11, %s2951_s24 }
0x2968   :  { %v1978_v59 = vpop.permute.xlu1 %1977 }
0x2969   :  { %v1980_v46 = vadd.f32 %v1978_v59, %v1970_v14 }
0x296b   :  { %2883 = vtanh.f32 %v1980_v46 }
0x2975   :  { %v2884_v15 = vpop.eup %2883 }
0x2976   :  { %1983 = vrot.lane.b32.xlu0 %v2884_v15, %s2950_s21 }
0x29e8   :  { %v1984_v38 = vpop.permute.xlu0 %1983 }
0x29e9   :  { %v1986_v39 = vmul.f32 %v2882_v9, %v1984_v38 }
0x29eb   :  { %v1992_v30 = vrot.slane %v1986_v39, 6 }
0x29ed   :  { %1993 = vrot.lane.b32.xlu1 %v1992_v30, %s2951_s24 }
0x2a5f   :  { %v1994_v16 = vpop.permute.xlu1 %1993 }
0x2a60   :  { %2640 = vmatmul.mubr.msk.f32.vlgmr.msra.gmra.mrb[18].mxu1 %vm254_vm4, %v1994_v16 }
0x2a61   :  { %2655 = vmatprep.mubr.msk.f32.mxu1 %vm2949_vm1, %v2948_v5  ;;  %v2080_v5 = vrot.slane %v1980_v46, 7  ;;  %2654 = vmatpush3.msra.mxu1 %v2178_v42 }
0x2b33   :  { %v2063_v17 = vpop.f32.mrb[18].mxu1 }
0x2b34   :  { %v2068_v19 = vrot.slane %v2063_v17, 1  ;;  %v2641_v6 = vpop.f32.mrb[19].mxu1 }
0x2b36   :  { %v2070_v32 = vadd.f32 %v2068_v19, %v3277_v36 }
0x2b38   :  { %v2071_v20 = vadd.f32 %v2070_v32, %v3318_v7 }
0x2b3a   :  { %2885 = vtanh.f32 %v2071_v20  ;;  %v2360_v22 = vmul.f32 -1.442695, %v2071_v20 }
0x2b3c   :  { %2887 = vpow2.f32 %v2360_v22 }
0x2b44   :  { %v2886_v21 = vpop.eup %2885 }
0x2b45   :  { %2084 = vrot.lane.b32.xlu0 %v2886_v21, %s2950_s21 }
0x2b46   :  { %v2888_v23 = vpop.eup %2887 }
0x2b47   :  { %v2075_v24 = vadd.f32 1.0, %v2888_v23 }
0x2b49   :  { %2889 = vrcp.f32 %v2075_v24 }
0x2b53   :  { %v2890_v25 = vpop.eup %2889 }
0x2b54   :  { %v2082_v36 = vmul.f32 %v2890_v25, %v2080_v5 }
0x2bb7   :  { %v2085_v27 = vpop.permute.xlu0 %2084 }
0x2bb8   :  { %v2087_v28 = vmul.f32 %v2890_v25, %v2085_v27 }
0x2bba   :  { %2089 = vrot.lane.b32.xlu1 %v2087_v28, %s2951_s24 }
0x2bbe   :  { %1428 = vrot.lane.b32.xlu1 %v3325_v18, %s2951_s24 }
0x2bc2   :  { %1652 = vrot.lane.b32.xlu1 %v3357_v41, %s2951_s24  ;;  %v1205_v41 = vld [vmem:[%s3505_s12] sm:$0xff] }
0x2bc3   :  { %v2752_v40 = vpack.c.bf16 %v1206_v35, %v1205_v41 }
0x2bc5   :  { %2753 = vmatpush3.bf16.msra.mxu0 %v2752_v40 }
0x2bc6   :  { %1876 = vrot.lane.b32.xlu1 %v1874_v54, %s2951_s24  ;;  %2754 = vmatprep.subr.bf16.mxu0 %v2947_v3 }
0x2c2c   :  { %v2090_v7 = vpop.permute.xlu1 %2089 }
0x2c2d   :  { %v3411_v29 = vadd.f32 %v2090_v7, %v2082_v36 }
0x2c2f   :  { %2891 = vtanh.f32 %v3411_v29 }
0x2c30   :  { %v1429_v31 = vpop.permute.xlu1 %1428 }
0x2c31   :  { %1431 = vst.msk [vmem:[#allocation2] sm:$0x2] %vm369_vm5, %v1429_v31 }
0x2c34   :  { %v1653_v33 = vpop.permute.xlu1 %1652 }
0x2c35   :  { %1655 = vst.msk [vmem:[#allocation2] sm:$0x8] %vm595_vm6, %v1653_v33 }
0x2c38   :  { %v1877_v34 = vpop.permute.xlu1 %1876 }
0x2c39   :  { %v2892_v18 = vpop.eup %2891  ;;  %1879 = vst.msk [vmem:[#allocation2] sm:$0x20] %vm821_vm7, %v1877_v34 }
0x2c3a   :  { %2095 = vrot.lane.b32.xlu0 %v2892_v18, %s2950_s21 }
0x2c3e   :  { %1540 = vrot.lane.b32.xlu0 %v3341_v47, %s2951_s24  ;;  %v1208_v47 = vld [vmem:[%s3505_s12 + $0x18] sm:$0xff] }
0x2c42   :  { %1764 = vrot.lane.b32.xlu0 %v3373_v26, %s2951_s24  ;;  %v2755_v26 = vpack.c.bf16 %v1208_v47, %v1207_v60 }
0x2c44   :  { %2756 = vmatpush3.bf16.msra.mxu0 %v2755_v26 }
0x2c46   :  { %1988 = vrot.lane.b32.xlu0 %v1986_v39, %s2951_s24 }
0x2cac   :  { %v2096_v43 = vpop.permute.xlu0 %2095 }
0x2cad   :  { %v2098_v44 = vmul.f32 %v2890_v25, %v2096_v43 }
0x2caf   :  { %2100 = vrot.lane.b32.xlu1 %v2098_v44, %s2951_s24  ;;  %s2952_s24 = smov 96  }
0x2cb0   :  { %v1541_v62 = vpop.permute.xlu0 %1540 }
0x2cb1   :  { %1543 = vst.msk [vmem:[#allocation2] sm:$0x4] %vm482_vm8, %v1541_v62 }
0x2cb4   :  { %v1765_v45 = vpop.permute.xlu0 %1764 }
0x2cb5   :  { %1767 = vst.msk [vmem:[#allocation2] sm:$0x10] %vm708_vm9, %v1765_v45 }
0x2cb8   :  { %v1989_v48 = vpop.permute.xlu0 %1988 }
0x2cb9   :  { %1991 = vst.msk [vmem:[#allocation2] sm:$0x40] %vm934_vm10, %v1989_v48 }
0x2d21   :  { %v2101_v3 = vpop.permute.xlu1 %2100 }
0x2d22   :  { %2103 = vst.msk [vmem:[#allocation2] sm:$0x80] %vm1047_vm11, %v2101_v3 }
0x2d29   :  { %v2104_v49 = vld [vmem:[#allocation2] sm:$0xff] }
0x2d2a   :  { %2651 = vmatmul.mubr.msk.f32.vlgmr.msra.gmra.mrb[18].mxu0 %vm254_vm4, %v2104_v49 }
0x2dfd   :  { %v2174_v50 = vpop.f32.mrb[18].mxu0 }
0x2dfe   :  { %v2652_v51 = vpop.f32.mrb[19].mxu0  ;;  %2656 = vmatmul.mubr.msk.f32.vlgmr.msra.gmra.mrb[20].mxu1 %vm144_vm0, %v2174_v50  ;;  %2283 = vst.msk [vmem:[#allocation3 - $0x6] sm:$0x80] %vm2281_vm12, %v2174_v50 }
0x2ed1   :  { %v2255_v54 = vpop.f32.mrb[20].mxu1 }
0x2ed2   :  { %v2256_v55 = vadd.f32 %v2362_v53, %v2255_v54  ;;  %v2657_v56 = vpop.f32.mrb[21].mxu1 }
0x2ed4   :  { %v2275_v57 = vmul.f32 1.442695, %v2256_v55  ;;  %v2262_v58 = vsel %vm2261_vm13, %v2256_v55, -1e+30 }
0x2ed5   :  { %2263 = vmax.xlane.f32.xlu0 %v2262_v58 }
0x2ed6   :  { %2893 = vpow2.f32 %v2275_v57 }
0x2ee0   :  { %v2894_v37 = vpop.eup %2893 }
0x2ee1   :  { %v2277_v61 = vsel %vm2274_vm14, %v2894_v37, 0.0 }
0x2ee2   :  { %v2278_v63 = vsel %vm2273_vm15, %v2256_v55, %v2277_v61 }
0x2eeb   :  { %2285 = vrot.lane.b32.xlu0 %v3218_v12, %s2952_s24 }
0x2f62   :  { %v2264_v0 = vpop.xlane.xlu0 %2263 }
0x2f63   :  { %v2265_v1 = vsub.f32 %v2262_v58, %v2264_v0 }
0x2f65   :  { %v2266_v2 = vmul.f32 1.442695, %v2265_v1 }
0x2f66   :  { %v2286_v4 = vpop.permute.xlu0 %2285 }
0x2f67   :  { %2895 = vpow2.f32 %v2266_v2  ;;  %2288 = vst.msk [vmem:[#allocation5 - $0x7] sm:$0x80] %vm1047_vm11, %v2286_v4 }
0x2f71   :  { %v2896_v8 = vpop.eup %2895 }
0x2f72   :  { %v2268_v9 = vsel %vm2261_vm13, %v2896_v8, 0.0 }
0x2f73   :  { %2269 = vadd.xlane.f32.xlu1 %v2268_v9 }
0x2f84   :  { %2290 = vrot.lane.b32.xlu1 %v3411_v29, %s2952_s24 }
0x2f85   :  { %2910 = shalt.err (!%p2907_p4)
}
0x2f86   :  { %s2911_s9 = scalar_lea.hbm %s3509_s16, 32 }
0x2f87   :  { %p2912_p5 = scmp.ne.s32.totalorder %s3509_s16, %s2911_s9  ;;  %p2915_p6 = scmp.lt.u32.totalorder %s2911_s9, %s3509_s16 }
0x2f89   :  { %p2917_p7 = pnand %p2915_p6, %p2912_p5 }
0x2f8b   :  { %2920 = shalt.err (!%p2917_p7)
}
0x2f8c   :  { %2305 = dma.vmem_to_hbm [thread:$0]  %s2303_s26, 32, %s3509_s16, [#allocation4]  }
0x2f8d   :  { %s2954_s3 = smov [#allocation5]  }
0x2f8e   :  { %s2312_s4 = sshll.u32 %s2954_s3, 4  ;;  %s2313_s4 = int_to_ptr.vmem [resolvable:$true] %s2312_s4 }
0x2f8f   :  { %s2921_s19 = scalar_lea.vmem %s2313_s4, 32  ;;  %p2926_p9 = scmp.lt.s32.totalorder %s2313_s4, %s2313_s4 }
0x2f90   :  { %p2922_p8 = scmp.ne.s32.totalorder %s2313_s4, %s2921_s19  ;;  %p2927_p10 = scmp.lt.s32.totalorder %s2921_s19, %s2921_s19 }
0x2f92   :  { %p2928_p11 = por %p2927_p10, %p2926_p9 }
0x2f94   :  { %p2929_p12 = pnand %p2928_p11, %p2922_p8 }
0x3000   :  { %v2270_v12 = vpop.xlane.xlu1 %2269 }
0x3001   :  { %2897 = vrcp.f32 %v2270_v12 }
0x3004   :  { %v2291_v10 = vpop.permute.xlu1 %2290 }
0x3005   :  { %2293 = vst.msk [vmem:[#allocation5 - $0x6] sm:$0x80] %vm1047_vm11, %v2291_v10 }
0x3006   :  { %2932 = shalt.err (!%p2929_p12)
}
0x3007   :  { %s2933_s20 = scalar_lea.hbm %s3510_s17, 32 }
0x3008   :  { %p2934_p13 = scmp.ne.s32.totalorder %s3510_s17, %s2933_s20  ;;  %p2937_p0 = scmp.lt.u32.totalorder %s2933_s20, %s3510_s17 }
0x300a   :  { %p2939_p1 = pnand %p2937_p0, %p2934_p13 }
0x300c   :  { %2942 = shalt.err (!%p2939_p1)
}
0x300d   :  { %2315 = dma.vmem_to_hbm [thread:$0]  %s2313_s4, 32, %s3510_s17, [#allocation6]   ;;  %v2898_v11 = vpop.eup %2897 }
0x300e   :  { %v2272_v13 = vmul.f32 %v2898_v11, %v2268_v9 }
0x3010   :  { %v2279_v14 = vsel %vm2261_vm13, %v2272_v13, %v2278_v63 }
0x3011   :  { %2280 = vst [vmem:[%s3508_s15] sm:$0xff] %v2279_v14 }
0x3012   :  { %2943 = dma.done.wait [#allocation4], 32  }
0x3013   :  { %2944 = vsyncadd [#allocation4], 4294967264 }
0x3014   :  { %2945 = dma.done.wait [#allocation6], 32  }
0x3015   :  { %2946 = vsyncadd [#allocation6], 4294967264 }
0x3016   :  { %2324 = vsyncpa [#allocation4], 1 }
0x3017   :  { %2325 = vsyncpa [#allocation6], 1 }

</bundles_post_ra>
